<compile_context>
chip_gen: v7x
topology: tpu7x:2x2x1
jax: 0.10.0
libtpu: 0.0.40
codegen_flags: <defaults>
</compile_context>

<pallas_src>
import functools
import math

import jax
import jax.numpy as jnp
from jax import lax
from jax.experimental import pallas as pl
from jax.experimental.pallas import tpu as pltpu

MIN_NORM = 1e-15
BALL_EPS = 4e-3          # float32 boundary eps used by HGCN PoincareBall.proj
_MIN_SQ = MIN_NORM * MIN_NORM


# --------------------- in-kernel Poincare-ball helpers (lane-dense) -------------------------
# Every helper takes `sq`, the per-(t, b) channel-group sum of squares already broadcast to all
# lanes of its group (computed on the MXU with a block-diagonal ones mask).

def _recip(x):
    r = pl.reciprocal(x, approx=True)
    return r * (2.0 - x * r)                                  # one Newton step -> ~f32 accuracy


def _artanh(x):
    return 0.5 * jnp.log((1.0 + x) * _recip(1.0 - x))


def _log0(p, sq, c):
    """logmap0 (proj_tan0 is the identity on the Poincare ball)."""
    sqrt_c = c ** 0.5
    inv = lax.rsqrt(jnp.maximum(sq, _MIN_SQ))                 # 1 / max(||p||, MIN_NORM)
    norm = sq * inv
    x = jnp.clip(sqrt_c * norm, 0.0, 1.0 - 1e-7)
    return (_artanh(x) * inv * (1.0 / sqrt_c)) * p


def _proj_log0(p, sq, c):
    """logmap0(proj(p)) fused: the projection clamps the artanh argument at 1 - BALL_EPS."""
    sqrt_c = c ** 0.5
    inv = lax.rsqrt(jnp.maximum(sq, _MIN_SQ))
    norm = sq * inv
    x = jnp.minimum(sqrt_c * norm, 1.0 - BALL_EPS)
    return (_artanh(x) * inv * (1.0 / sqrt_c)) * p


def _to_hyper(u, sq, c):
    """proj(expmap0(u)) fused.  Returns (point, ||point||^2 broadcast per group)."""
    sqrt_c = c ** 0.5
    inv = lax.rsqrt(jnp.maximum(sq, _MIN_SQ))
    norm = sq * inv
    t = jnp.minimum(jnp.tanh(sqrt_c * norm), 1.0 - BALL_EPS)
    p = (t * inv * (1.0 / sqrt_c)) * u
    return p, (t * t) * (1.0 / c)


def _clamp_tan(u, sq, c):
    """logmap0(proj(expmap0(u))) == clamp of the tangent norm at artanh(1-eps)/sqrt(c)."""
    sqrt_c = c ** 0.5
    rmax = math.atanh(1.0 - BALL_EPS) / sqrt_c
    inv = lax.rsqrt(jnp.maximum(sq, _MIN_SQ))
    return jnp.where(sq > rmax * rmax, (rmax * inv) * u, u)


def _clamp_and_hyper(u, sq, c):
    """Fused _clamp_tan + _to_hyper on the same slab sharing a single rsqrt (EUP dedup)."""
    sqrt_c = c ** 0.5
    rmax = math.atanh(1.0 - BALL_EPS) / sqrt_c
    inv = lax.rsqrt(jnp.maximum(sq, _MIN_SQ))
    norm = sq * inv
    tan_clamped = jnp.where(sq > rmax * rmax, (rmax * inv) * u, u)
    t = jnp.minimum(jnp.tanh(sqrt_c * norm), 1.0 - BALL_EPS)
    p = (t * inv * (1.0 / sqrt_c)) * u
    return tan_clamped, p, (t * t) * (1.0 / c)


def _mobius_add(x, y, x2, y2, xy, c):
    num = (1.0 + 2.0 * c * xy + c * y2) * x + (1.0 - c * x2) * y
    den = jnp.maximum(1.0 + 2.0 * c * xy + (c * c) * x2 * y2, MIN_NORM)
    return num * _recip(den)


# --------------------------------------- kernel ---------------------------------------------
def _residual_layer_kernel(x_halo_ref, x_cur_ref, w_conv_ref, b_conv_ref,
                           w_res_ref, b_res_ref, w_skip_ref, b_skip_ref,
                           m_res_ref, m_acc_ref, m_skip_ref,
                           skip_ref, res_ref,
                           *, num_taps, dilation, c):
    hp, L = x_halo_ref.shape           # halo rows, packed lane width (B*C_res)
    t_blk = x_cur_ref.shape[0]

    def gsum(v, mask_ref):             # per-(t, b) channel-group sum broadcast per lane (MXU, f32)
        return jnp.dot(v, mask_ref[...], preferred_element_type=jnp.float32)

    # Causal left zero padding: on grid step 0 the halo block (clamped to block 0 by its
    # index_map) is zeroed via jnp.where (NaN/Inf safe).
    halo = x_halo_ref[...].astype(jnp.float32)
    halo = jnp.where(pl.program_id(0) == 0, jnp.zeros_like(halo), halo)
    cur = x_cur_ref[...].astype(jnp.float32)
    win = jnp.concatenate([halo, cur], axis=0)                # (hp + t_blk, L), hyperbolic pts

    win_sq = gsum(win * win, m_res_ref)
    win_tan = _log0(win, win_sq, c)                           # HypConv1d: to tangent space

    # Causal dilated conv: all taps gathered into one (t_blk, K*L) window and contracted with a
    # single stacked block-diagonal (K*L, 2L) weight (filter + gate fused), bf16 operands.
    taps = []
    for k in range(num_taps):
        s = (num_taps - 1 - k) * dilation
        taps.append(win_tan[hp - s:hp - s + t_blk])
    win_stack = jnp.concatenate(taps, axis=-1).astype(jnp.bfloat16)
    acc = (jnp.dot(win_stack, w_conv_ref[...], preferred_element_type=jnp.float32)
           + b_conv_ref[...])                                 # (t_blk, 2L), bias added once

    # Fused filter+gate group norm (single 2L-wide mask matmul) and tangent-norm clamp.
    # HypConv1d's expmap0->proj followed by forward()'s proj->to_tangent is a tangent-norm clamp.
    acc_sq = gsum(acc * acc, m_acc_ref)
    cfg_tan = _clamp_tan(acc, acc_sq, c)
    cf_tan = cfg_tan[:, :L]
    cg_tan = cfg_tan[:, L:]

    tf = jnp.tanh(cf_tan)
    cf_hyp, _ = _to_hyper(tf, gsum(tf * tf, m_res_ref), c)
    fx = cf_hyp * jax.nn.sigmoid(cg_tan)                      # gated activation
    fx_tan = _proj_log0(fx, gsum(fx * fx, m_res_ref), c)

    # conv_res: 1x1 Conv1d == matmul in tangent space (batch-block-diagonal weight, bf16).
    fx_lin = (jnp.dot(fx_tan.astype(jnp.bfloat16), w_res_ref[...],
                      preferred_element_type=jnp.float32) + b_res_ref[...])
    fl_sq = gsum(fx_lin * fx_lin, m_res_ref)
    skip_tan, fx_hyp, fx_hyp_sq = _clamp_and_hyper(fx_lin, fl_sq, c)

    # conv_skip: 1x1 Conv1d.
    skip_lin = (jnp.dot(skip_tan.astype(jnp.bfloat16), w_skip_ref[...],
                        preferred_element_type=jnp.float32) + b_skip_ref[...])
    skip_hyp, _ = _to_hyper(skip_lin, gsum(skip_lin * skip_lin, m_skip_ref), c)

    # residual = mobius_add(fx, x); the reference applies no final proj here.
    y2 = win_sq[hp:]
    xy = gsum(fx_hyp * cur, m_res_ref)
    residual = _mobius_add(fx_hyp, cur, fx_hyp_sq, y2, xy, c)

    skip_ref[...] = skip_hyp.astype(skip_ref.dtype)
    res_ref[...] = residual.astype(res_ref.dtype)


# --------------------------------- wrapper + params -----------------------------------------
def _block_diag(w, batch):
    """(Cin, Cout) -> (B*Cin, B*Cout) batch-block-diagonal weight (lane layout = b*C + c)."""
    return jnp.kron(jnp.eye(batch, dtype=w.dtype), w)


def pack_params(params, batch):
    """Hoisted, once-per-layer packing: block-diagonal (lane-dense) weights, batch-tiled biases
    and the block-diagonal ones masks that compute channel-group norms on the MXU."""
    wf, bf, wg, bg, wres, bres, wskip, bskip = params
    K, C, _ = wf.shape
    Cs = wskip.shape[-1]
    w_conv = jnp.concatenate(
        [jnp.concatenate([_block_diag(wf[k], batch), _block_diag(wg[k], batch)], axis=-1)
         for k in range(K)], axis=0).astype(jnp.bfloat16)                        # (K*L, 2L)
    b_conv = jnp.concatenate([jnp.tile(bf, (1, batch)), jnp.tile(bg, (1, batch))],
                             axis=-1).astype(jnp.float32)                        # (1, 2L)
    w_res = _block_diag(wres, batch).astype(jnp.bfloat16)                        # (L, L)
    b_res = jnp.tile(bres, (1, batch)).astype(jnp.float32)                       # (1, L)
    w_skip = _block_diag(wskip, batch).astype(jnp.bfloat16)                      # (L, Ls)
    b_skip = jnp.tile(bskip, (1, batch)).astype(jnp.float32)                     # (1, Ls)
    m_res = jnp.kron(jnp.eye(batch, dtype=jnp.float32), jnp.ones((C, C), jnp.float32))
    m_acc = jnp.kron(jnp.eye(2 * batch, dtype=jnp.float32), jnp.ones((C, C), jnp.float32))
    m_skip = jnp.kron(jnp.eye(batch, dtype=jnp.float32), jnp.ones((Cs, Cs), jnp.float32))
    return dict(w_conv=w_conv, b_conv=b_conv, w_res=w_res, b_res=b_res,
                w_skip=w_skip, b_skip=b_skip, m_res=m_res, m_acc=m_acc, m_skip=m_skip)


def _choose_time_block(T, halo, cap):
    hp = max(8, ((halo + 7) // 8) * 8)          # sublane-aligned halo block
    if T % hp != 0:
        raise ValueError(f"sequence length T={T} must be a multiple of the halo block {hp}")
    divs = [d for d in range(hp, T + 1, hp) if T % d == 0]
    under = [d for d in divs if d <= cap]
    if not under:
        raise ValueError(
            f"no time tile <= time_block={cap}; smallest valid tile for T={T} is {min(divs)}")
    # Prefer tiles that leave an even number (>= 2) of grid steps so the 'parallel' time axis
    # can shard across both TensorCores on v7x; otherwise take the largest tile that fits.
    even = [d for d in under if (T // d) >= 2 and (T // d) % 2 == 0]
    return (max(even) if even else max(under)), hp


def residual_layer_forward(x, packed, *, kernel_size, dilation, c, time_block=1024):
    """x: (T, B, C_res) hyperbolic points; packed = pack_params(params, B).
    Returns (skip, residual) with shapes (T, B, skip_size) and (T, B, C_res)."""
    T, B, C = x.shape
    K = kernel_size * 2 - 1
    halo = (K - 1) * dilation
    c = float(c)
    L = B * C
    Ls = packed["w_skip"].shape[-1]
    Cs = Ls // B

    t_blk, hp = _choose_time_block(T, halo, time_block)
    grid = (T // t_blk,)
    ratio = t_blk // hp

    x2d = x.reshape(T, L).astype(jnp.float32)
    kern = functools.partial(_residual_layer_kernel, num_taps=K, dilation=dilation, c=c)

    def resident(a):       # same block every grid step -> operand stays VMEM-resident
        nd = a.ndim
        # TODO(synk): pipeline_mode=pl.Buffered(1) would drop the redundant second buffer for
        # these resident operands (nice-to-have on v7x's 32 MiB scoped VMEM); kept at the
        # default here for maximum portability.
        return pl.BlockSpec(a.shape, lambda i: (0,) * nd)

    grid_spec = pltpu.PrefetchScalarGridSpec(
        num_scalar_prefetch=0,
        grid=grid,
        in_specs=[
            # halo: the hp rows immediately preceding this time tile (clamped to block 0 on
            # step 0, where the kernel zeroes it == causal left zero padding).
            pl.BlockSpec((hp, L), lambda i: (jnp.maximum(i * ratio - 1, 0), 0)),
            pl.BlockSpec((t_blk, L), lambda i: (i, 0)),
            resident(packed["w_conv"]), resident(packed["b_conv"]),
            resident(packed["w_res"]), resident(packed["b_res"]),
            resident(packed["w_skip"]), resident(packed["b_skip"]),
            resident(packed["m_res"]), resident(packed["m_acc"]), resident(packed["m_skip"]),
        ],
        out_specs=(pl.BlockSpec((t_blk, Ls), lambda i: (i, 0)),
                   pl.BlockSpec((t_blk, L), lambda i: (i, 0))),
    )

    # Outputs kept f32 (spec parity); emit bf16 here if the surrounding model tolerates it
    # (halves HBM writeback, biggest relative win on v5e).
    skip2d, res2d = pl.pallas_call(
        kern,
        out_shape=(jax.ShapeDtypeStruct((T, Ls), jnp.float32),
                   jax.ShapeDtypeStruct((T, L), jnp.float32)),
        grid_spec=grid_spec,
        compiler_params=pltpu.CompilerParams(
            dimension_semantics=("parallel",),            # time tiles independent (halo'd)
            vmem_limit_bytes=32 * 1024 * 1024),
    )(x2d, x2d, packed["w_conv"], packed["b_conv"], packed["w_res"], packed["b_res"],
      packed["w_skip"], packed["b_skip"], packed["m_res"], packed["m_acc"], packed["m_skip"])

    return skip2d.reshape(T, B, Cs), res2d.reshape(T, B, C)


def _glorot(key, shape):
    fan = shape[-2] + shape[-1]
    std = (6.0 / fan) ** 0.5
    return jax.random.uniform(key, shape, jnp.float32, -std, std)


def init_params(key, residual_size, skip_size, kernel_size):
    K = kernel_size * 2 - 1
    ks = jax.random.split(key, 6)
    # HypConv1d weights stored per-tap as (K, C_in, C_out) (== Conv1d weight[o, i, k].T per tap)
    wf = _glorot(ks[0], (K, residual_size, residual_size))
    bf = jnp.zeros((1, residual_size), jnp.float32)
    wg = _glorot(ks[1], (K, residual_size, residual_size))
    bg = jnp.zeros((1, residual_size), jnp.float32)
    # conv_res / conv_skip: 1x1 convs as (C_in, C_out) matrices (glorot per reset_parameters)
    wres = _glorot(ks[2], (residual_size, residual_size))
    bres = jax.random.uniform(ks[3], (1, residual_size), jnp.float32, -0.1, 0.1)
    wskip = _glorot(ks[4], (residual_size, skip_size))
    bskip = jax.random.uniform(ks[5], (1, skip_size), jnp.float32, -0.1, 0.1)
    return (wf, bf, wg, bg, wres, bres, wskip, bskip)


# ----------------------- host-side reference (input construction + check) -------------------
def _h_norm(v):
    return jnp.maximum(jnp.sqrt(jnp.sum(v * v, axis=-1, keepdims=True)), MIN_NORM)


def _h_proj(p, c):
    maxn = (1.0 - BALL_EPS) / jnp.sqrt(c)
    n = _h_norm(p)
    return jnp.where(n > maxn, p / n * maxn, p)


def _h_expmap0(u, c):
    sc = jnp.sqrt(c)
    n = _h_norm(u)
    return jnp.tanh(sc * n) * u / (sc * n)


def _h_logmap0(p, c):
    sc = jnp.sqrt(c)
    n = _h_norm(p)
    return jnp.arctanh(jnp.clip(sc * n, 0.0, 1.0 - 1e-7)) * p / (sc * n)


def _h_mobius_add(a, b, c):
    a2 = jnp.sum(a * a, -1, keepdims=True)
    b2 = jnp.sum(b * b, -1, keepdims=True)
    ab = jnp.sum(a * b, -1, keepdims=True)
    num = (1.0 + 2.0 * c * ab + c * b2) * a + (1.0 - c * a2) * b
    den = 1.0 + 2.0 * c * ab + c * c * a2 * b2
    return num / jnp.maximum(den, MIN_NORM)


def reference_forward(x, params, *, kernel_size, dilation, c):
    """Pure-jnp reference of the PyTorch module (same HypConv1d assumptions as the kernel)."""
    T, B, C = x.shape
    K = kernel_size * 2 - 1
    P = (K - 1) * dilation
    wf, bf, wg, bg, wres, bres, wskip, bskip = params
    to_hyper = lambda u: _h_proj(_h_expmap0(u, c), c)
    to_tan = lambda p: _h_logmap0(p, c)                    # proj_tan0 is identity

    x_tan = to_tan(x)
    x_pad = jnp.concatenate([jnp.zeros((P, B, C), x_tan.dtype), x_tan], axis=0)

    def conv(w, b):
        out = jnp.zeros((T, B, w.shape[-1]), jnp.float32) + b
        for k in range(K):
            out = out + jnp.einsum("tbc,cd->tbd", x_pad[k * dilation:k * dilation + T], w[k])
        return out

    conv_filter = to_hyper(conv(wf, bf))                   # HypConv1d outputs (hyperbolic)
    conv_gate = to_hyper(conv(wg, bg))

    cf = to_hyper(jnp.tanh(to_tan(_h_proj(conv_filter, c))))
    cg = to_tan(_h_proj(conv_gate, c))
    fx = cf * jax.nn.sigmoid(cg)
    fx = to_tan(_h_proj(fx, c))
    fx = jnp.einsum("tbc,cd->tbd", fx, wres) + bres
    fx = to_hyper(fx)
    skip = to_tan(_h_proj(fx, c))
    skip = jnp.einsum("tbc,cd->tbd", skip, wskip) + bskip
    skip = to_hyper(skip)
    residual = _h_mobius_add(fx, x, c)
    return skip, residual


if __name__ == "__main__":
    T, B = 64, 16                          # 16 batch x 8 channels -> 128-lane packed layout
    residual_size, skip_size = 8, 16
    kernel_size, dilation, c = 2, 2, 1.0   # effective taps K = 3, causal halo = 4 steps

    key = jax.random.PRNGKey(0)
    kx, kp = jax.random.split(key)
    x_tan0 = 0.1 * jax.random.normal(kx, (T, B, residual_size), jnp.float32)
    x = _h_proj(_h_expmap0(x_tan0, c), c)  # valid Poincare-ball inputs (host-side glue)
    params = init_params(kp, residual_size, skip_size, kernel_size)
    packed = pack_params(params, B)        # block-diagonal packing hoisted: once per layer

    fwd = jax.jit(functools.partial(residual_layer_forward, kernel_size=kernel_size,
                                    dilation=dilation, c=c))
    skip, residual = fwd(x, packed)
    jax.block_until_ready((skip, residual))

    assert skip.shape == (T, B, skip_size)
    assert residual.shape == (T, B, residual_size)
    assert bool(jnp.all(jnp.isfinite(skip))) and bool(jnp.all(jnp.isfinite(residual)))

    # sanity check vs the pure-jnp reference (loose tol: matmuls use bf16 operands on the MXU)
    ref_skip, ref_res = reference_forward(x, params, kernel_size=kernel_size,
                                          dilation=dilation, c=c)
    err = max(float(jnp.max(jnp.abs(skip - ref_skip))),
              float(jnp.max(jnp.abs(residual - ref_res))))
    assert err < 3e-2, f"mismatch vs reference: max abs err {err}"
    print("KERNEL_OK")
</pallas_src>

<mosaic_0001>
module attributes {stable_mosaic.version = 11 : i64} {
  func.func @_residual_layer_kernel(%arg0: i32, %arg1: memref<8x128xf32, #tpu.memory_space<vmem>>, %arg2: memref<32x128xf32, #tpu.memory_space<vmem>>, %arg3: memref<384x256xbf16, #tpu.memory_space<vmem>>, %arg4: memref<1x256xf32, #tpu.memory_space<vmem>>, %arg5: memref<128x128xbf16, #tpu.memory_space<vmem>>, %arg6: memref<1x128xf32, #tpu.memory_space<vmem>>, %arg7: memref<128x256xbf16, #tpu.memory_space<vmem>>, %arg8: memref<1x256xf32, #tpu.memory_space<vmem>>, %arg9: memref<128x128xf32, #tpu.memory_space<vmem>>, %arg10: memref<256x256xf32, #tpu.memory_space<vmem>>, %arg11: memref<256x256xf32, #tpu.memory_space<vmem>>, %arg12: memref<32x256xf32, #tpu.memory_space<vmem>>, %arg13: memref<32x128xf32, #tpu.memory_space<vmem>>) attributes {dimension_semantics = [#tpu.dimension_semantics<parallel>], iteration_bounds = array<i64: 2>, scalar_prefetch = 0 : i64, scratch_operands = 0 : i64, tpu.core_type = #tpu.core_type<tc>, window_params = [{transform_indices = @transform_0, window_bounds = array<i64: 8, 128>}, {transform_indices = @transform_1, window_bounds = array<i64: 32, 128>}, {pipeline_mode = #tpu.pipeline_mode<synchronous>, transform_indices = @transform_2, window_bounds = array<i64: 384, 256>}, {pipeline_mode = #tpu.pipeline_mode<synchronous>, transform_indices = @transform_3, window_bounds = array<i64: 1, 256>}, {pipeline_mode = #tpu.pipeline_mode<synchronous>, transform_indices = @transform_4, window_bounds = array<i64: 128, 128>}, {pipeline_mode = #tpu.pipeline_mode<synchronous>, transform_indices = @transform_5, window_bounds = array<i64: 1, 128>}, {pipeline_mode = #tpu.pipeline_mode<synchronous>, transform_indices = @transform_6, window_bounds = array<i64: 128, 256>}, {pipeline_mode = #tpu.pipeline_mode<synchronous>, transform_indices = @transform_7, window_bounds = array<i64: 1, 256>}, {pipeline_mode = #tpu.pipeline_mode<synchronous>, transform_indices = @transform_8, window_bounds = array<i64: 128, 128>}, {pipeline_mode = #tpu.pipeline_mode<synchronous>, transform_indices = @transform_9, window_bounds = array<i64: 256, 256>}, {pipeline_mode = #tpu.pipeline_mode<synchronous>, transform_indices = @transform_10, window_bounds = array<i64: 256, 256>}, {transform_indices = @transform_11, window_bounds = array<i64: 32, 256>}, {transform_indices = @transform_12, window_bounds = array<i64: 32, 128>}]} {
    %c0 = arith.constant 0 : index
    %c0_0 = arith.constant 0 : index
    %0 = vector.load %arg1[%c0, %c0_0] : memref<8x128xf32, #tpu.memory_space<vmem>>, vector<8x128xf32>
    %c0_i32 = arith.constant 0 : i32
    %1 = arith.cmpi eq, %arg0, %c0_i32 : i32
    %cst = arith.constant 0.000000e+00 : f32
    %2 = vector.broadcast %cst : f32 to vector<8x128xf32>
    %3 = arith.select %1, %2, %0 : vector<8x128xf32>
    %c0_1 = arith.constant 0 : index
    %c0_2 = arith.constant 0 : index
    %4 = vector.load %arg2[%c0_1, %c0_2] : memref<32x128xf32, #tpu.memory_space<vmem>>, vector<32x128xf32>
    %5 = tpu.concatenate %3, %4 in 0 : vector<8x128xf32>, vector<32x128xf32> -> vector<40x128xf32>
    %6 = arith.mulf %5, %5 : vector<40x128xf32>
    %c0_3 = arith.constant 0 : index
    %c0_4 = arith.constant 0 : index
    %7 = vector.load %arg9[%c0_3, %c0_4] : memref<128x128xf32, #tpu.memory_space<vmem>>, vector<128x128xf32>
    %cst_5 = arith.constant dense<0.000000e+00> : vector<40x128xf32>
    %8 = tpu.matmul %6, %7, %cst_5 {dimension_numbers = #tpu.dot_dimension_numbers<[1], [0], [0], [1], [0, 0, 1, 1], [], []>} : vector<40x128xf32>, vector<128x128xf32>, vector<40x128xf32> -> vector<40x128xf32>
    %cst_6 = arith.constant 1.000000e-30 : f32
    %9 = vector.broadcast %cst_6 : f32 to vector<40x128xf32>
    %10 = arith.maximumf %8, %9 : vector<40x128xf32>
    %11 = math.rsqrt %10 : vector<40x128xf32>
    %12 = arith.mulf %8, %11 : vector<40x128xf32>
    %cst_7 = arith.constant 1.000000e+00 : f32
    %13 = vector.broadcast %cst_7 : f32 to vector<40x128xf32>
    %14 = arith.mulf %13, %12 : vector<40x128xf32>
    %cst_8 = arith.constant 0.000000e+00 : f32
    %cst_9 = arith.constant 0.99999988 : f32
    %15 = vector.broadcast %cst_8 : f32 to vector<40x128xf32>
    %16 = arith.maximumf %15, %14 : vector<40x128xf32>
    %17 = vector.broadcast %cst_9 : f32 to vector<40x128xf32>
    %18 = arith.minimumf %17, %16 : vector<40x128xf32>
    %cst_10 = arith.constant 1.000000e+00 : f32
    %19 = vector.broadcast %cst_10 : f32 to vector<40x128xf32>
    %20 = arith.addf %19, %18 : vector<40x128xf32>
    %cst_11 = arith.constant 1.000000e+00 : f32
    %21 = vector.broadcast %cst_11 : f32 to vector<40x128xf32>
    %22 = arith.subf %21, %18 : vector<40x128xf32>
    %23 = tpu.reciprocal %22 {approx = true} : vector<40x128xf32> -> vector<40x128xf32>
    %24 = arith.mulf %22, %23 : vector<40x128xf32>
    %cst_12 = arith.constant 2.000000e+00 : f32
    %25 = vector.broadcast %cst_12 : f32 to vector<40x128xf32>
    %26 = arith.subf %25, %24 : vector<40x128xf32>
    %27 = arith.mulf %23, %26 : vector<40x128xf32>
    %28 = arith.mulf %20, %27 : vector<40x128xf32>
    %29 = math.log %28 : vector<40x128xf32>
    %cst_13 = arith.constant 5.000000e-01 : f32
    %30 = vector.broadcast %cst_13 : f32 to vector<40x128xf32>
    %31 = arith.mulf %30, %29 : vector<40x128xf32>
    %32 = arith.mulf %31, %11 : vector<40x128xf32>
    %cst_14 = arith.constant 1.000000e+00 : f32
    %33 = vector.broadcast %cst_14 : f32 to vector<40x128xf32>
    %34 = arith.mulf %32, %33 : vector<40x128xf32>
    %35 = arith.mulf %34, %5 : vector<40x128xf32>
    %36 = vector.extract_strided_slice %35 {offsets = [4, 0], sizes = [32, 128], strides = [1, 1]} : vector<40x128xf32> to vector<32x128xf32>
    %37 = vector.extract_strided_slice %35 {offsets = [6, 0], sizes = [32, 128], strides = [1, 1]} : vector<40x128xf32> to vector<32x128xf32>
    %38 = vector.extract_strided_slice %35 {offsets = [8, 0], sizes = [32, 128], strides = [1, 1]} : vector<40x128xf32> to vector<32x128xf32>
    %39 = tpu.concatenate %36, %37, %38 in 1 : vector<32x128xf32>, vector<32x128xf32>, vector<32x128xf32> -> vector<32x384xf32>
    %40 = arith.truncf %39 : vector<32x384xf32> to vector<32x384xbf16>
    %c0_15 = arith.constant 0 : index
    %c0_16 = arith.constant 0 : index
    %41 = vector.load %arg3[%c0_15, %c0_16] : memref<384x256xbf16, #tpu.memory_space<vmem>>, vector<384x256xbf16>
    %cst_17 = arith.constant dense<0.000000e+00> : vector<32x256xf32>
    %42 = tpu.matmul %40, %41, %cst_17 {dimension_numbers = #tpu.dot_dimension_numbers<[1], [0], [0], [1], [0, 0, 1, 1], [], []>} : vector<32x384xbf16>, vector<384x256xbf16>, vector<32x256xf32> -> vector<32x256xf32>
    %c0_18 = arith.constant 0 : index
    %c0_19 = arith.constant 0 : index
    %43 = vector.load %arg4[%c0_18, %c0_19] : memref<1x256xf32, #tpu.memory_space<vmem>>, vector<1x256xf32>
    %44 = vector.broadcast %43 : vector<1x256xf32> to vector<32x256xf32>
    %45 = arith.addf %42, %44 : vector<32x256xf32>
    %46 = arith.mulf %45, %45 : vector<32x256xf32>
    %c0_20 = arith.constant 0 : index
    %c0_21 = arith.constant 0 : index
    %47 = vector.load %arg10[%c0_20, %c0_21] : memref<256x256xf32, #tpu.memory_space<vmem>>, vector<256x256xf32>
    %cst_22 = arith.constant dense<0.000000e+00> : vector<32x256xf32>
    %48 = tpu.matmul %46, %47, %cst_22 {dimension_numbers = #tpu.dot_dimension_numbers<[1], [0], [0], [1], [0, 0, 1, 1], [], []>} : vector<32x256xf32>, vector<256x256xf32>, vector<32x256xf32> -> vector<32x256xf32>
    %cst_23 = arith.constant 1.000000e-30 : f32
    %49 = vector.broadcast %cst_23 : f32 to vector<32x256xf32>
    %50 = arith.maximumf %48, %49 : vector<32x256xf32>
    %51 = math.rsqrt %50 : vector<32x256xf32>
    %cst_24 = arith.constant 9.64911842 : f32
    %52 = vector.broadcast %cst_24 : f32 to vector<32x256xf32>
    %53 = arith.cmpf ogt, %48, %52 : vector<32x256xf32>
    %cst_25 = arith.constant 3.10630298 : f32
    %54 = vector.broadcast %cst_25 : f32 to vector<32x256xf32>
    %55 = arith.mulf %54, %51 : vector<32x256xf32>
    %56 = arith.mulf %55, %45 : vector<32x256xf32>
    %57 = arith.select %53, %56, %45 : vector<32x256xi1>, vector<32x256xf32>
    %58 = vector.extract_strided_slice %57 {offsets = [0, 0], sizes = [32, 128], strides = [1, 1]} : vector<32x256xf32> to vector<32x128xf32>
    %59 = vector.extract_strided_slice %57 {offsets = [0, 128], sizes = [32, 128], strides = [1, 1]} : vector<32x256xf32> to vector<32x128xf32>
    %60 = math.tanh %58 : vector<32x128xf32>
    %61 = arith.mulf %60, %60 : vector<32x128xf32>
    %c0_26 = arith.constant 0 : index
    %c0_27 = arith.constant 0 : index
    %62 = vector.load %arg9[%c0_26, %c0_27] : memref<128x128xf32, #tpu.memory_space<vmem>>, vector<128x128xf32>
    %cst_28 = arith.constant dense<0.000000e+00> : vector<32x128xf32>
    %63 = tpu.matmul %61, %62, %cst_28 {dimension_numbers = #tpu.dot_dimension_numbers<[1], [0], [0], [1], [0, 0, 1, 1], [], []>} : vector<32x128xf32>, vector<128x128xf32>, vector<32x128xf32> -> vector<32x128xf32>
    %cst_29 = arith.constant 1.000000e-30 : f32
    %64 = vector.broadcast %cst_29 : f32 to vector<32x128xf32>
    %65 = arith.maximumf %63, %64 : vector<32x128xf32>
    %66 = math.rsqrt %65 : vector<32x128xf32>
    %67 = arith.mulf %63, %66 : vector<32x128xf32>
    %cst_30 = arith.constant 1.000000e+00 : f32
    %68 = vector.broadcast %cst_30 : f32 to vector<32x128xf32>
    %69 = arith.mulf %68, %67 : vector<32x128xf32>
    %70 = math.tanh %69 : vector<32x128xf32>
    %cst_31 = arith.constant 0.995999991 : f32
    %71 = vector.broadcast %cst_31 : f32 to vector<32x128xf32>
    %72 = arith.minimumf %70, %71 : vector<32x128xf32>
    %73 = arith.mulf %72, %66 : vector<32x128xf32>
    %cst_32 = arith.constant 1.000000e+00 : f32
    %74 = vector.broadcast %cst_32 : f32 to vector<32x128xf32>
    %75 = arith.mulf %73, %74 : vector<32x128xf32>
    %76 = arith.mulf %75, %60 : vector<32x128xf32>
    %77 = arith.negf %59 : vector<32x128xf32>
    %78 = math.exp %77 : vector<32x128xf32>
    %cst_33 = arith.constant 1.000000e+00 : f32
    %79 = vector.broadcast %cst_33 : f32 to vector<32x128xf32>
    %80 = arith.addf %79, %78 : vector<32x128xf32>
    %81 = arith.divf %79, %80 : vector<32x128xf32>
    %82 = arith.mulf %76, %81 : vector<32x128xf32>
    %83 = arith.mulf %82, %82 : vector<32x128xf32>
    %c0_34 = arith.constant 0 : index
    %c0_35 = arith.constant 0 : index
    %84 = vector.load %arg9[%c0_34, %c0_35] : memref<128x128xf32, #tpu.memory_space<vmem>>, vector<128x128xf32>
    %cst_36 = arith.constant dense<0.000000e+00> : vector<32x128xf32>
    %85 = tpu.matmul %83, %84, %cst_36 {dimension_numbers = #tpu.dot_dimension_numbers<[1], [0], [0], [1], [0, 0, 1, 1], [], []>} : vector<32x128xf32>, vector<128x128xf32>, vector<32x128xf32> -> vector<32x128xf32>
    %cst_37 = arith.constant 1.000000e-30 : f32
    %86 = vector.broadcast %cst_37 : f32 to vector<32x128xf32>
    %87 = arith.maximumf %85, %86 : vector<32x128xf32>
    %88 = math.rsqrt %87 : vector<32x128xf32>
    %89 = arith.mulf %85, %88 : vector<32x128xf32>
    %cst_38 = arith.constant 1.000000e+00 : f32
    %90 = vector.broadcast %cst_38 : f32 to vector<32x128xf32>
    %91 = arith.mulf %90, %89 : vector<32x128xf32>
    %cst_39 = arith.constant 0.995999991 : f32
    %92 = vector.broadcast %cst_39 : f32 to vector<32x128xf32>
    %93 = arith.minimumf %91, %92 : vector<32x128xf32>
    %cst_40 = arith.constant 1.000000e+00 : f32
    %94 = vector.broadcast %cst_40 : f32 to vector<32x128xf32>
    %95 = arith.addf %94, %93 : vector<32x128xf32>
    %cst_41 = arith.constant 1.000000e+00 : f32
    %96 = vector.broadcast %cst_41 : f32 to vector<32x128xf32>
    %97 = arith.subf %96, %93 : vector<32x128xf32>
    %98 = tpu.reciprocal %97 {approx = true} : vector<32x128xf32> -> vector<32x128xf32>
    %99 = arith.mulf %97, %98 : vector<32x128xf32>
    %cst_42 = arith.constant 2.000000e+00 : f32
    %100 = vector.broadcast %cst_42 : f32 to vector<32x128xf32>
    %101 = arith.subf %100, %99 : vector<32x128xf32>
    %102 = arith.mulf %98, %101 : vector<32x128xf32>
    %103 = arith.mulf %95, %102 : vector<32x128xf32>
    %104 = math.log %103 : vector<32x128xf32>
    %cst_43 = arith.constant 5.000000e-01 : f32
    %105 = vector.broadcast %cst_43 : f32 to vector<32x128xf32>
    %106 = arith.mulf %105, %104 : vector<32x128xf32>
    %107 = arith.mulf %106, %88 : vector<32x128xf32>
    %cst_44 = arith.constant 1.000000e+00 : f32
    %108 = vector.broadcast %cst_44 : f32 to vector<32x128xf32>
    %109 = arith.mulf %107, %108 : vector<32x128xf32>
    %110 = arith.mulf %109, %82 : vector<32x128xf32>
    %111 = arith.truncf %110 : vector<32x128xf32> to vector<32x128xbf16>
    %c0_45 = arith.constant 0 : index
    %c0_46 = arith.constant 0 : index
    %112 = vector.load %arg5[%c0_45, %c0_46] : memref<128x128xbf16, #tpu.memory_space<vmem>>, vector<128x128xbf16>
    %cst_47 = arith.constant dense<0.000000e+00> : vector<32x128xf32>
    %113 = tpu.matmul %111, %112, %cst_47 {dimension_numbers = #tpu.dot_dimension_numbers<[1], [0], [0], [1], [0, 0, 1, 1], [], []>} : vector<32x128xbf16>, vector<128x128xbf16>, vector<32x128xf32> -> vector<32x128xf32>
    %c0_48 = arith.constant 0 : index
    %c0_49 = arith.constant 0 : index
    %114 = vector.load %arg6[%c0_48, %c0_49] : memref<1x128xf32, #tpu.memory_space<vmem>>, vector<1x128xf32>
    %115 = vector.broadcast %114 : vector<1x128xf32> to vector<32x128xf32>
    %116 = arith.addf %113, %115 : vector<32x128xf32>
    %117 = arith.mulf %116, %116 : vector<32x128xf32>
    %c0_50 = arith.constant 0 : index
    %c0_51 = arith.constant 0 : index
    %118 = vector.load %arg9[%c0_50, %c0_51] : memref<128x128xf32, #tpu.memory_space<vmem>>, vector<128x128xf32>
    %cst_52 = arith.constant dense<0.000000e+00> : vector<32x128xf32>
    %119 = tpu.matmul %117, %118, %cst_52 {dimension_numbers = #tpu.dot_dimension_numbers<[1], [0], [0], [1], [0, 0, 1, 1], [], []>} : vector<32x128xf32>, vector<128x128xf32>, vector<32x128xf32> -> vector<32x128xf32>
    %cst_53 = arith.constant 1.000000e-30 : f32
    %120 = vector.broadcast %cst_53 : f32 to vector<32x128xf32>
    %121 = arith.maximumf %119, %120 : vector<32x128xf32>
    %122 = math.rsqrt %121 : vector<32x128xf32>
    %123 = arith.mulf %119, %122 : vector<32x128xf32>
    %cst_54 = arith.constant 9.64911842 : f32
    %124 = vector.broadcast %cst_54 : f32 to vector<32x128xf32>
    %125 = arith.cmpf ogt, %119, %124 : vector<32x128xf32>
    %cst_55 = arith.constant 3.10630298 : f32
    %126 = vector.broadcast %cst_55 : f32 to vector<32x128xf32>
    %127 = arith.mulf %126, %122 : vector<32x128xf32>
    %128 = arith.mulf %127, %116 : vector<32x128xf32>
    %129 = arith.select %125, %128, %116 : vector<32x128xi1>, vector<32x128xf32>
    %cst_56 = arith.constant 1.000000e+00 : f32
    %130 = vector.broadcast %cst_56 : f32 to vector<32x128xf32>
    %131 = arith.mulf %130, %123 : vector<32x128xf32>
    %132 = math.tanh %131 : vector<32x128xf32>
    %cst_57 = arith.constant 0.995999991 : f32
    %133 = vector.broadcast %cst_57 : f32 to vector<32x128xf32>
    %134 = arith.minimumf %132, %133 : vector<32x128xf32>
    %135 = arith.mulf %134, %122 : vector<32x128xf32>
    %cst_58 = arith.constant 1.000000e+00 : f32
    %136 = vector.broadcast %cst_58 : f32 to vector<32x128xf32>
    %137 = arith.mulf %135, %136 : vector<32x128xf32>
    %138 = arith.mulf %137, %116 : vector<32x128xf32>
    %139 = arith.mulf %134, %134 : vector<32x128xf32>
    %cst_59 = arith.constant 1.000000e+00 : f32
    %140 = vector.broadcast %cst_59 : f32 to vector<32x128xf32>
    %141 = arith.mulf %139, %140 : vector<32x128xf32>
    %142 = arith.truncf %129 : vector<32x128xf32> to vector<32x128xbf16>
    %c0_60 = arith.constant 0 : index
    %c0_61 = arith.constant 0 : index
    %143 = vector.load %arg7[%c0_60, %c0_61] : memref<128x256xbf16, #tpu.memory_space<vmem>>, vector<128x256xbf16>
    %cst_62 = arith.constant dense<0.000000e+00> : vector<32x256xf32>
    %144 = tpu.matmul %142, %143, %cst_62 {dimension_numbers = #tpu.dot_dimension_numbers<[1], [0], [0], [1], [0, 0, 1, 1], [], []>} : vector<32x128xbf16>, vector<128x256xbf16>, vector<32x256xf32> -> vector<32x256xf32>
    %c0_63 = arith.constant 0 : index
    %c0_64 = arith.constant 0 : index
    %145 = vector.load %arg8[%c0_63, %c0_64] : memref<1x256xf32, #tpu.memory_space<vmem>>, vector<1x256xf32>
    %146 = vector.broadcast %145 : vector<1x256xf32> to vector<32x256xf32>
    %147 = arith.addf %144, %146 : vector<32x256xf32>
    %148 = arith.mulf %147, %147 : vector<32x256xf32>
    %c0_65 = arith.constant 0 : index
    %c0_66 = arith.constant 0 : index
    %149 = vector.load %arg11[%c0_65, %c0_66] : memref<256x256xf32, #tpu.memory_space<vmem>>, vector<256x256xf32>
    %cst_67 = arith.constant dense<0.000000e+00> : vector<32x256xf32>
    %150 = tpu.matmul %148, %149, %cst_67 {dimension_numbers = #tpu.dot_dimension_numbers<[1], [0], [0], [1], [0, 0, 1, 1], [], []>} : vector<32x256xf32>, vector<256x256xf32>, vector<32x256xf32> -> vector<32x256xf32>
    %cst_68 = arith.constant 1.000000e-30 : f32
    %151 = vector.broadcast %cst_68 : f32 to vector<32x256xf32>
    %152 = arith.maximumf %150, %151 : vector<32x256xf32>
    %153 = math.rsqrt %152 : vector<32x256xf32>
    %154 = arith.mulf %150, %153 : vector<32x256xf32>
    %cst_69 = arith.constant 1.000000e+00 : f32
    %155 = vector.broadcast %cst_69 : f32 to vector<32x256xf32>
    %156 = arith.mulf %155, %154 : vector<32x256xf32>
    %157 = math.tanh %156 : vector<32x256xf32>
    %cst_70 = arith.constant 0.995999991 : f32
    %158 = vector.broadcast %cst_70 : f32 to vector<32x256xf32>
    %159 = arith.minimumf %157, %158 : vector<32x256xf32>
    %160 = arith.mulf %159, %153 : vector<32x256xf32>
    %cst_71 = arith.constant 1.000000e+00 : f32
    %161 = vector.broadcast %cst_71 : f32 to vector<32x256xf32>
    %162 = arith.mulf %160, %161 : vector<32x256xf32>
    %163 = arith.mulf %162, %147 : vector<32x256xf32>
    %164 = vector.extract_strided_slice %8 {offsets = [8, 0], sizes = [32, 128], strides = [1, 1]} : vector<40x128xf32> to vector<32x128xf32>
    %165 = arith.mulf %138, %4 : vector<32x128xf32>
    %c0_72 = arith.constant 0 : index
    %c0_73 = arith.constant 0 : index
    %166 = vector.load %arg9[%c0_72, %c0_73] : memref<128x128xf32, #tpu.memory_space<vmem>>, vector<128x128xf32>
    %cst_74 = arith.constant dense<0.000000e+00> : vector<32x128xf32>
    %167 = tpu.matmul %165, %166, %cst_74 {dimension_numbers = #tpu.dot_dimension_numbers<[1], [0], [0], [1], [0, 0, 1, 1], [], []>} : vector<32x128xf32>, vector<128x128xf32>, vector<32x128xf32> -> vector<32x128xf32>
    %cst_75 = arith.constant 2.000000e+00 : f32
    %168 = vector.broadcast %cst_75 : f32 to vector<32x128xf32>
    %169 = arith.mulf %168, %167 : vector<32x128xf32>
    %cst_76 = arith.constant 1.000000e+00 : f32
    %170 = vector.broadcast %cst_76 : f32 to vector<32x128xf32>
    %171 = arith.addf %170, %169 : vector<32x128xf32>
    %cst_77 = arith.constant 1.000000e+00 : f32
    %172 = vector.broadcast %cst_77 : f32 to vector<32x128xf32>
    %173 = arith.mulf %172, %164 : vector<32x128xf32>
    %174 = arith.addf %171, %173 : vector<32x128xf32>
    %175 = arith.mulf %174, %138 : vector<32x128xf32>
    %cst_78 = arith.constant 1.000000e+00 : f32
    %176 = vector.broadcast %cst_78 : f32 to vector<32x128xf32>
    %177 = arith.mulf %176, %141 : vector<32x128xf32>
    %cst_79 = arith.constant 1.000000e+00 : f32
    %178 = vector.broadcast %cst_79 : f32 to vector<32x128xf32>
    %179 = arith.subf %178, %177 : vector<32x128xf32>
    %180 = arith.mulf %179, %4 : vector<32x128xf32>
    %181 = arith.addf %175, %180 : vector<32x128xf32>
    %cst_80 = arith.constant 2.000000e+00 : f32
    %182 = vector.broadcast %cst_80 : f32 to vector<32x128xf32>
    %183 = arith.mulf %182, %167 : vector<32x128xf32>
    %cst_81 = arith.constant 1.000000e+00 : f32
    %184 = vector.broadcast %cst_81 : f32 to vector<32x128xf32>
    %185 = arith.addf %184, %183 : vector<32x128xf32>
    %cst_82 = arith.constant 1.000000e+00 : f32
    %186 = vector.broadcast %cst_82 : f32 to vector<32x128xf32>
    %187 = arith.mulf %186, %141 : vector<32x128xf32>
    %188 = arith.mulf %187, %164 : vector<32x128xf32>
    %189 = arith.addf %185, %188 : vector<32x128xf32>
    %cst_83 = arith.constant 1.000000e-15 : f32
    %190 = vector.broadcast %cst_83 : f32 to vector<32x128xf32>
    %191 = arith.maximumf %189, %190 : vector<32x128xf32>
    %192 = tpu.reciprocal %191 {approx = true} : vector<32x128xf32> -> vector<32x128xf32>
    %193 = arith.mulf %191, %192 : vector<32x128xf32>
    %cst_84 = arith.constant 2.000000e+00 : f32
    %194 = vector.broadcast %cst_84 : f32 to vector<32x128xf32>
    %195 = arith.subf %194, %193 : vector<32x128xf32>
    %196 = arith.mulf %192, %195 : vector<32x128xf32>
    %197 = arith.mulf %181, %196 : vector<32x128xf32>
    %c0_85 = arith.constant 0 : index
    %c0_86 = arith.constant 0 : index
    %198 = vector.load %arg12[%c0_85, %c0_86] : memref<32x256xf32, #tpu.memory_space<vmem>>, vector<32x256xf32>
    tpu.vector_store %arg12[%c0_85, %c0_86], %163 {strides = array<i32>} : memref<32x256xf32, #tpu.memory_space<vmem>>, vector<32x256xf32>,
    %c0_87 = arith.constant 0 : index
    %c0_88 = arith.constant 0 : index
    %199 = vector.load %arg13[%c0_87, %c0_88] : memref<32x128xf32, #tpu.memory_space<vmem>>, vector<32x128xf32>
    tpu.vector_store %arg13[%c0_87, %c0_88], %197 {strides = array<i32>} : memref<32x128xf32, #tpu.memory_space<vmem>>, vector<32x128xf32>,
    return
  }
  func.func @transform_0(%arg0: i32) -> (i32, i32) {
    %c4_i32 = arith.constant 4 : i32
    %0 = arith.muli %arg0, %c4_i32 : i32
    %c1_i32 = arith.constant 1 : i32
    %1 = arith.subi %0, %c1_i32 : i32
    %c0_i32 = arith.constant 0 : i32
    %2 = arith.maxsi %1, %c0_i32 : i32
    %c0_i32_0 = arith.constant 0 : i32
    %c0_i32_1 = arith.constant 0 : i32
    return %2, %c0_i32_0 : i32, i32
  }
  func.func @transform_1(%arg0: i32) -> (i32, i32) {
    %c0_i32 = arith.constant 0 : i32
    %c0_i32_0 = arith.constant 0 : i32
    return %arg0, %c0_i32 : i32, i32
  }
  func.func @transform_2(%arg0: i32) -> (i32, i32) {
    %c0_i32 = arith.constant 0 : i32
    %c0_i32_0 = arith.constant 0 : i32
    %c0_i32_1 = arith.constant 0 : i32
    return %c0_i32, %c0_i32_0 : i32, i32
  }
  func.func @transform_3(%arg0: i32) -> (i32, i32) {
    %c0_i32 = arith.constant 0 : i32
    %c0_i32_0 = arith.constant 0 : i32
    %c0_i32_1 = arith.constant 0 : i32
    return %c0_i32, %c0_i32_0 : i32, i32
  }
  func.func @transform_4(%arg0: i32) -> (i32, i32) {
    %c0_i32 = arith.constant 0 : i32
    %c0_i32_0 = arith.constant 0 : i32
    %c0_i32_1 = arith.constant 0 : i32
    return %c0_i32, %c0_i32_0 : i32, i32
  }
  func.func @transform_5(%arg0: i32) -> (i32, i32) {
    %c0_i32 = arith.constant 0 : i32
    %c0_i32_0 = arith.constant 0 : i32
    %c0_i32_1 = arith.constant 0 : i32
    return %c0_i32, %c0_i32_0 : i32, i32
  }
  func.func @transform_6(%arg0: i32) -> (i32, i32) {
    %c0_i32 = arith.constant 0 : i32
    %c0_i32_0 = arith.constant 0 : i32
    %c0_i32_1 = arith.constant 0 : i32
    return %c0_i32, %c0_i32_0 : i32, i32
  }
  func.func @transform_7(%arg0: i32) -> (i32, i32) {
    %c0_i32 = arith.constant 0 : i32
    %c0_i32_0 = arith.constant 0 : i32
    %c0_i32_1 = arith.constant 0 : i32
    return %c0_i32, %c0_i32_0 : i32, i32
  }
  func.func @transform_8(%arg0: i32) -> (i32, i32) {
    %c0_i32 = arith.constant 0 : i32
    %c0_i32_0 = arith.constant 0 : i32
    %c0_i32_1 = arith.constant 0 : i32
    return %c0_i32, %c0_i32_0 : i32, i32
  }
  func.func @transform_9(%arg0: i32) -> (i32, i32) {
    %c0_i32 = arith.constant 0 : i32
    %c0_i32_0 = arith.constant 0 : i32
    %c0_i32_1 = arith.constant 0 : i32
    return %c0_i32, %c0_i32_0 : i32, i32
  }
  func.func @transform_10(%arg0: i32) -> (i32, i32) {
    %c0_i32 = arith.constant 0 : i32
    %c0_i32_0 = arith.constant 0 : i32
    %c0_i32_1 = arith.constant 0 : i32
    return %c0_i32, %c0_i32_0 : i32, i32
  }
  func.func @transform_11(%arg0: i32) -> (i32, i32) {
    %c0_i32 = arith.constant 0 : i32
    %c0_i32_0 = arith.constant 0 : i32
    return %arg0, %c0_i32 : i32, i32
  }
  func.func @transform_12(%arg0: i32) -> (i32, i32) {
    %c0_i32 = arith.constant 0 : i32
    %c0_i32_0 = arith.constant 0 : i32
    return %arg0, %c0_i32 : i32, i32
  }
}

</mosaic_0001>

<bundles_post_ra>
// kernel: residual_layer_forward.1
= control target key start
LH: loop header
LB: loop body
LE: loop exit
PB: predicated region body
PF: predicated region fallthrough
CT: control target
= control target key end

     0   :  { %s4683_s0 = inlined_call_operand.vmem [shape: f32[64,128], index: 0, kind: input, shape index: {}, may-alias: {0,1}]   ;;  %s4684_s1 = inlined_call_operand.vmem [shape: f32[64,128], index: 1, kind: input, shape index: {}, may-alias: {0,1}]   ;;  %s4685_s2 = inlined_call_operand.hbm [shape: bf16[384,256], index: 2, kind: input, shape index: {}]   ;;  %s4686_s3 = inlined_call_operand.vmem [shape: f32[1,256], index: 3, kind: input, shape index: {}]   ;;  %s4687_s4 = inlined_call_operand.vmem [shape: bf16[128,128], index: 4, kind: input, shape index: {}]   ;;  %s4688_s5 = inlined_call_operand.vmem [shape: f32[1,128], index: 5, kind: input, shape index: {}]   ;;  %s4689_s6 = inlined_call_operand.vmem [shape: bf16[128,256], index: 6, kind: input, shape index: {}]   ;;  %s4690_s7 = inlined_call_operand.vmem [shape: f32[1,256], index: 7, kind: input, shape index: {}]   ;;  %s4691_s8 = inlined_call_operand.hbm [shape: f32[128,128], index: 8, kind: input, shape index: {}]   ;;  %s4692_s9 = inlined_call_operand.hbm [shape: f32[256,256], index: 9, kind: input, shape index: {}]   ;;  %s4693_s10 = inlined_call_operand.hbm [shape: f32[256,256], index: 10, kind: input, shape index: {}]   ;;  %s4694_s11 = inlined_call_operand.vmem [shape: f32[64,256], index: 11, kind: output, shape index: {0}]   ;;  %s4695_s12 = inlined_call_operand.vmem [shape: f32[64,128], index: 12, kind: output, shape index: {1}]  }
   0x1   :  { %4700 = sst [smem:[#allocation12_spill]] %s4694_s11 }
   0x2   :  { %18 = vsyncpa [#allocation3], 0 }
   0x3   :  { %19 = vsyncpa [#allocation5], 0 }
   0x4   :  { %20 = vsyncpa [#allocation8], 0  ;;  %s3964_s21 = smov 0  }
   0x5 LB: > { %s4696_s22 = sadd.s32 4294967295, %s3885_s21   ;;  %p2685_p0 = scmp.ge.s32.totalorder %s3885_s21, 1  ;;  %s3885_s21 = sphi %s3964_s21, %s26_s21  }
   0x6   : > { %p332_p1 = scmp.lt.s32.totalorder %s3885_s21, 3  ;;  %p3974_p2 = scmp.eq.s32.totalorder %s4696_s22, 0 }
   0x7   : > { %s3887_s25 = smov [#allocation4]   ;;  %s3888_s27 = smov [#allocation2]  }
   0x8   : > { %s4701_s23 = scalar_select %p3974_p2, 1, 0 }
   0x9   : > { %p3978_p3 = pnand %p2685_p0, %p332_p1  ;;  %s372_s26 = sshll.u32 %s3887_s25, 4  ;;  %s3982_s26 = int_to_ptr.vmem [resolvable:$true] %s372_s26 }
   0xa   : > { %s344_s28 = sshll.u32 %s3888_s27, 4  ;;  %s3889_s30 = smov [#allocation6]   ;;  %s3986_s28 = int_to_ptr.vmem [resolvable:$true] %s344_s28 }
   0xb   : > { %s4702_s24 = scalar_select %p3978_p3, 1, 0 }
   0xc   : > { %p3437_p4 = pneg %p3978_p3  ;;  %s385_s13 = sshll.u32 %s3889_s30, 4  ;;  %s3994_s13 = int_to_ptr.vmem [resolvable:$true] %s385_s13 }
   0xd   : > { %s3755_s16 = scalar_lea.hbm %s4691_s8, 2048 }
   0xe   : > { %p3990_p5 = pnand %p3974_p2, %p3437_p4  ;;  %p3756_p6 = scmp.ne.s32.totalorder %s4691_s8, %s3755_s16 }
   0xf   : > { %p3762_p10 = scmp.lt.u32.totalorder %s3755_s16, %s4691_s8 }
  0x10   : > { %p4004_p7 = pneg %p3990_p5 }
  0x12   : > { %p3758_p8 = pnand %p4004_p7, %p3756_p6 }
  0x14   : > { %p3759_p9 = pneg %p3758_p8 }
  0x16   : > { %p3764_p11 = pnand %p3762_p10, %p3759_p9 }
  0x18   : > { %3767 = shalt.err (!%p3764_p11)
}
  0x19   : > { %s3768_s27 = scalar_lea.vmem %s3982_s26, 2048  ;;  %p3776_p1 = scmp.lt.s32.totalorder %s3982_s26, %s3982_s26 }
  0x1a   : > { %p3769_p12 = scmp.ne.s32.totalorder %s3982_s26, %s3768_s27  ;;  %p3777_p4 = scmp.lt.s32.totalorder %s3768_s27, %s3768_s27 }
  0x1c   : > { %p3771_p13 = pnand %p3769_p12, %p4004_p7  ;;  %p3778_p6 = por %p3777_p4, %p3776_p1 }
  0x1e   : > { %p3772_p0 = pneg %p3771_p13 }
  0x20   : > { %p3779_p8 = pnand %p3778_p6, %p3772_p0 }
  0x22   : > { %3782 = shalt.err (!%p3779_p8)
}
  0x23   : > { %s3890_s30 = smov 128   ;;  %s3891_s14 = smov 8  }
  0x24   : > { %3443 = dma.hbm_to_vmem [thread:$0]  (!%p3990_p5), %s4691_s8, 2048, %s3982_s26, [#allocation5], %s3890_s30, %s3890_s30, %s3891_s14  }
  0x25   : > { %s3783_s20 = scalar_lea.hbm %s4685_s2, 6144 }
  0x26   : > { %p3784_p9 = scmp.ne.s32.totalorder %s4685_s2, %s3783_s20  ;;  %p3790_p12 = scmp.lt.u32.totalorder %s3783_s20, %s4685_s2 }
  0x28   : > { %p3786_p10 = pnand %p3784_p9, %p4004_p7 }
  0x2a   : > { %p3787_p11 = pneg %p3786_p10 }
  0x2c   : > { %p3792_p13 = pnand %p3790_p12, %p3787_p11 }
  0x2e   : > { %3795 = shalt.err (!%p3792_p13)
}
  0x2f   : > { %s3796_s26 = scalar_lea.vmem %s3986_s28, 6144  ;;  %p3804_p6 = scmp.lt.s32.totalorder %s3986_s28, %s3986_s28 }
  0x30   : > { %p3797_p0 = scmp.ne.s32.totalorder %s3986_s28, %s3796_s26  ;;  %p3805_p8 = scmp.lt.s32.totalorder %s3796_s26, %s3796_s26 }
  0x32   : > { %p3799_p1 = pnand %p3797_p0, %p4004_p7  ;;  %p3806_p9 = por %p3805_p8, %p3804_p6 }
  0x34   : > { %p3800_p4 = pneg %p3799_p1 }
  0x36   : > { %p3807_p10 = pnand %p3806_p9, %p3800_p4 }
  0x38   : > { %3810 = shalt.err (!%p3807_p10)
}
  0x39   : > { %3440 = dma.hbm_to_vmem [thread:$0]  (!%p3990_p5), %s4685_s2, 6144, %s3986_s28, [#allocation3], %s3890_s30, %s3890_s30, %s3891_s14  }
  0x3a   : > { %s3811_s17 = scalar_lea.hbm %s4692_s9, 8192 }
  0x3b   : > { %p3812_p11 = scmp.ne.s32.totalorder %s4692_s9, %s3811_s17  ;;  %p3818_p0 = scmp.lt.u32.totalorder %s3811_s17, %s4692_s9 }
  0x3d   : > { %p3814_p12 = pnand %p3812_p11, %p4004_p7 }
  0x3f   : > { %p3815_p13 = pneg %p3814_p12 }
  0x41   : > { %p3820_p1 = pnand %p3818_p0, %p3815_p13 }
  0x43   : > { %3823 = shalt.err (!%p3820_p1)
}
  0x44   : > { %s3824_s28 = scalar_lea.vmem %s3994_s13, 8192  ;;  %p3832_p9 = scmp.lt.s32.totalorder %s3994_s13, %s3994_s13 }
  0x45   : > { %p3825_p4 = scmp.ne.s32.totalorder %s3994_s13, %s3824_s28  ;;  %p3833_p10 = scmp.lt.s32.totalorder %s3824_s28, %s3824_s28 }
  0x47   : > { %p3827_p6 = pnand %p3825_p4, %p4004_p7  ;;  %p3834_p11 = por %p3833_p10, %p3832_p9 }
  0x49   : > { %p3828_p8 = pneg %p3827_p6 }
  0x4b   : > { %p3835_p12 = pnand %p3834_p11, %p3828_p8 }
  0x4d   : > { %3838 = shalt.err (!%p3835_p12)
}
  0x4e   : > { %s3892_s30 = smov 256   ;;  %s3893_s14 = smov 16  }
  0x4f   : > { %3446 = dma.hbm_to_vmem [thread:$0]  (!%p3990_p5), %s4692_s9, 8192, %s3994_s13, [#allocation5], %s3892_s30, %s3892_s30, %s3893_s14  }
  0x50   : > { %s3894_s22 = smov [#allocation7]   ;;  %s3839_s18 = scalar_lea.hbm %s4693_s10, 8192 }
  0x51   : > { %s398_s15 = sshll.u32 %s3894_s22, 4  ;;  %p3840_p13 = scmp.ne.s32.totalorder %s4693_s10, %s3839_s18  ;;  %s399_s15 = int_to_ptr.vmem [resolvable:$true] %s398_s15 }
  0x52   : > { %p3846_p4 = scmp.lt.u32.totalorder %s3839_s18, %s4693_s10 }
  0x53   : > { %p3842_p0 = pnand %p3840_p13, %p4004_p7 }
  0x55   : > { %p3843_p1 = pneg %p3842_p0 }
  0x57   : > { %p3848_p6 = pnand %p3846_p4, %p3843_p1 }
  0x59   : > { %3851 = shalt.err (!%p3848_p6)
}
  0x5a   : > { %s3852_s13 = scalar_lea.vmem %s399_s15, 8192  ;;  %p3860_p11 = scmp.lt.s32.totalorder %s399_s15, %s399_s15 }
  0x5b   : > { %p3853_p8 = scmp.ne.s32.totalorder %s399_s15, %s3852_s13  ;;  %p3861_p12 = scmp.lt.s32.totalorder %s3852_s13, %s3852_s13 }
  0x5d   : > { %p3855_p9 = pnand %p3853_p8, %p4004_p7  ;;  %p3862_p2 = por %p3861_p12, %p3860_p11 }
  0x5f   : > { %p3856_p10 = pneg %p3855_p9 }
  0x61   : > { %p3863_p3 = pnand %p3862_p2, %p3856_p10 }
  0x63   : > { %3866 = shalt.err (!%p3863_p3)
}
  0x64   : > { %3449 = dma.hbm_to_vmem [thread:$0]  (!%p3990_p5), %s4693_s10, 8192, %s399_s15, [#allocation8], %s3892_s30, %s3892_s30, %s3893_s14  }
  0x65   : > { %p4705_p13 = scmp.ne.s32.totalorder %s4702_s24, 0 }
  0x66   : > { %p4706_p0 = scmp.ne.s32.totalorder (!%p4705_p13), %s4701_s23, 0 }
  0x67   : > { %438 = sbr.rel (%p4705_p13) target bundleno = 2403 (0x963), region = 64 }
  0x6e   : > { %3872 = dma.done.wait (%p4706_p0), [#allocation3], 6144  }
  0x6f   : > { %3874 = vsyncadd (%p4706_p0), [#allocation3], 4294961152 }
  0x70   : > { %3876 = dma.done.wait (%p4706_p0), [#allocation5], 10240  }
  0x71   : > { %3878 = vsyncadd (%p4706_p0), [#allocation5], 4294957056 }
  0x72   : > { %3880 = dma.done.wait (%p4706_p0), [#allocation8], 8192  }
  0x73   : > { %3882 = vsyncadd (%p4706_p0), [#allocation8], 4294959104  ;;  %v3895_v0 = vmov 0.0|0.0   ;;  %vm3896_vm0 = vmmov 0   ;;  %v3897_v1 = vmov 0.0   ;;  %v553_v2 = vld [vmem:[#allocation4] sm:$0xff] }
  0x74   : > { %3125 = vmatprep.subr.bf16.mxu0 %v3895_v0  ;;  %2938 = vmatprep.mubr.msk.f32.mxu0 %vm3896_vm0, %v3897_v1  ;;  %v554_v3 = vld [vmem:[#allocation4 + $0x8] sm:$0xff]  ;;  %v555_v4 = vld [vmem:[#allocation4 + $0x10] sm:$0xff]  ;;  %v556_v6 = vld [vmem:[#allocation4 + $0x18] sm:$0xff]  ;;  %s4707_s24 = sadd.s32 4294967295, %s3885_s21   ;;  %vm749_vm1 = vcmask 1045504   ;;  %vm764_vm2 = vcmask 1043456  }
  0x75   : > { %v4105_v5 = vpack.c.bf16 %v554_v3, %v553_v2  ;;  %s2696_s29 = sshll.u32 %s4707_s24, 2  ;;  %v4110_v7 = vpack.c.bf16 %v556_v6, %v555_v4  ;;  %v557_v8 = vld [vmem:[#allocation4 + $0x20] sm:$0xff]  ;;  %v558_v9 = vld [vmem:[#allocation4 + $0x28] sm:$0xff]  ;;  %v559_v11 = vld [vmem:[#allocation4 + $0x30] sm:$0xff]  ;;  %s4708_s18 = sld [smem:[#allocation12_spill]] }
  0x76   : > { %s2697_s19 = sadd.s32 4294967295, %s2696_s29  ;;  %v4113_v10 = vpack.c.bf16 %v558_v9, %v557_v8  ;;  %v560_v12 = vld [vmem:[#allocation4 + $0x38] sm:$0xff]  ;;  %v561_v13 = vld [vmem:[#allocation4 + $0x40] sm:$0xff]  ;;  %v562_v14 = vld [vmem:[#allocation4 + $0x48] sm:$0xff]  ;;  %p519_p5 = scmp.lt.s32.totalorder %s2696_s29, 7 }
  0x77   : > { %3127 = vmatpush3.bf16.msra.mxu0 %v4105_v5  ;;  %p508_p2 = scmp.gt.s32.totalorder %s2697_s19, 0  ;;  %p2698_p3 = scmp.lt.s32.totalorder %s2697_s19, 7  ;;  %v4116_v15 = vpack.c.bf16 %v560_v12, %v559_v11  ;;  %v563_v16 = vld [vmem:[#allocation4 + $0x50] sm:$0xff]  ;;  %v564_v17 = vld [vmem:[#allocation4 + $0x58] sm:$0xff]  ;;  %v4119_v18 = vpack.c.bf16 %v562_v14, %v561_v13  ;;  %v565_v19 = vld [vmem:[#allocation4 + $0x60] sm:$0xff] }
  0x78   : > { %3128 = vmatprep.subr.bf16.mxu0 %v3895_v0  ;;  %v566_v20 = vld [vmem:[#allocation4 + $0x68] sm:$0xff]  ;;  %s4714_s29 = smov (!%p519_p5, %s2696_s29), 7  ;;  %v4124_v21 = vpack.c.bf16 %v564_v17, %v563_v16  ;;  %v567_v22 = vld [vmem:[#allocation4 + $0x70] sm:$0xff]  ;;  %v568_v23 = vld [vmem:[#allocation4 + $0x78] sm:$0xff] }
  0x79   : > { %s4710_s19 = smov (!%p508_p2, %s2697_s19), 0  ;;  %s2705_s17 = sshll.u32 %s4714_s29, 3  ;;  %v4133_v24 = vpack.c.bf16 %v566_v20, %v565_v19  ;;  %v4145_v26 = vpack.c.bf16 %v568_v23, %v567_v22  ;;  %v3481_v36 = vld [vmem:[#allocation2 + $0x4] ss:$8 sps:$4 sm:$0xff]   ;;  %v3483_v37 = vld [vmem:[#allocation2] ss:$8 sps:$4 sm:$0xff]  }
  0x7a   : > { %s4712_s19 = smov (!%p2698_p3, %s4710_s19), 7  ;;  %s4142_s23 = scalar_lea.vmem %s4684_s1, %s2705_s17  ;;  %1117 = vmatprep.subr.bf16.mxu1 %v3481_v36  ;;  %v3484_v38 = vld [vmem:[#allocation2 + $0x14] ss:$8 sps:$4 sm:$0xff]   ;;  %v3486_v39 = vld [vmem:[#allocation2 + $0x10] ss:$8 sps:$4 sm:$0xff]   ;;  %v1232_v6 = vld [vmem:[#allocation6 + $0x8] sm:$0xff] }
  0x7b   : > { %3130 = vmatpush3.bf16.msra.mxu0 %v4110_v7  ;;  %s2703_s30 = sshll.u32 %s4712_s19, 3  ;;  %v4148_v27 = vld [vmem:[%s4142_s23] sm:$0xff]  ;;  %v4158_v30 = vld [vmem:[%s4142_s23 + $0x8] sm:$0xff]  ;;  %v4165_v32 = vld [vmem:[%s4142_s23 + $0x10] sm:$0xff]  ;;  %1118 = vmatpush1.bf16.msra.mxu1 %v3483_v37  ;;  %s535_s22 = scalar_lea.vmem %s4695_s12, %s2705_s17 }
  0x7c   : > { %3131 = vmatprep.subr.bf16.mxu0 %v3895_v0  ;;  %s3479_s14 = scalar_select %p4706_p0, 0, 255  ;;  %v549_v29 = vmul.f32 %v4148_v27, %v4148_v27  ;;  %v550_v31 = vmul.f32 %v4158_v30, %v4158_v30  ;;  %v551_v33 = vmul.f32 %v4165_v32, %v4165_v32  ;;  %v4172_v34 = vld [vmem:[%s4142_s23 + $0x18] sm:$0xff]  ;;  %1119 = vmatprep.subr.bf16.mxu1 %v3484_v38  ;;  %v3487_v40 = vld [vmem:[#allocation2 + $0x24] ss:$8 sps:$4 sm:$0xff]   ;;  %v1233_v12 = vld [vmem:[#allocation6 + $0x10] sm:$0xff] }
  0x7d   : > { %s513_s16 = scalar_lea.vmem %s4683_s0, %s2703_s30  ;;  %v552_v35 = vmul.f32 %v4172_v34, %v4172_v34  ;;  %v3489_v41 = vld [vmem:[#allocation2 + $0x20] ss:$8 sps:$4 sm:$0xff]   ;;  %v3490_v42 = vld [vmem:[#allocation2 + $0x34] ss:$8 sps:$4 sm:$0xff]   ;;  %v3492_v43 = vld [vmem:[#allocation2 + $0x30] ss:$8 sps:$4 sm:$0xff]  }
  0x7e   : > { %v4135_v25 = vld [vmem:[%s513_s16] sm:%s3479_s14]  ;;  %v3496_v46 = vld [vmem:[#allocation2 + $0x54] ss:$8 sps:$4 sm:$0xff]   ;;  %v3498_v47 = vld [vmem:[#allocation2 + $0x50] ss:$8 sps:$4 sm:$0xff]   ;;  %s2794_s17 = sshll.u32 %s4714_s29, 4 }
  0x7f   : > { %3133 = vmatpush3.bf16.msra.mxu0 %v4113_v10  ;;  %v548_v28 = vmul.f32 %v4135_v25, %v4135_v25  ;;  %1120 = vmatpush1.bf16.msra.mxu1 %v3486_v39  ;;  %v3493_v44 = vld [vmem:[#allocation2 + $0x44] ss:$8 sps:$4 sm:$0xff]   ;;  %v3495_v45 = vld [vmem:[#allocation2 + $0x40] ss:$8 sps:$4 sm:$0xff]   ;;  %v3502_v50 = vld [vmem:[#allocation2 + $0x74] ss:$8 sps:$4 sm:$0xff]   ;;  %s4662_s20 = scalar_lea.vmem %s4708_s18, %s2794_s17 }
  0x80   : > { %3134 = vmatprep.subr.bf16.mxu0 %v3895_v0  ;;  %1121 = vmatprep.subr.bf16.mxu1 %v3487_v40  ;;  %v3499_v48 = vld [vmem:[#allocation2 + $0x64] ss:$8 sps:$4 sm:$0xff]   ;;  %v3501_v49 = vld [vmem:[#allocation2 + $0x60] ss:$8 sps:$4 sm:$0xff]   ;;  %v3504_v51 = vld [vmem:[#allocation2 + $0x70] ss:$8 sps:$4 sm:$0xff]  }
  0x81   : > { %v3505_v52 = vld [vmem:[#allocation2 + $0x84] ss:$8 sps:$4 sm:$0xff]   ;;  %v3507_v53 = vld [vmem:[#allocation2 + $0x80] ss:$8 sps:$4 sm:$0xff]   ;;  %v3508_v54 = vld [vmem:[#allocation2 + $0x94] ss:$8 sps:$4 sm:$0xff]  }
  0x82   : > { %v3510_v55 = vld [vmem:[#allocation2 + $0x90] ss:$8 sps:$4 sm:$0xff]   ;;  %v3511_v56 = vld [vmem:[#allocation2 + $0xa4] ss:$8 sps:$4 sm:$0xff]   ;;  %v3513_v57 = vld [vmem:[#allocation2 + $0xa0] ss:$8 sps:$4 sm:$0xff]  }
  0x83   : > { %3136 = vmatpush3.bf16.msra.mxu0 %v4116_v15  ;;  %1122 = vmatpush1.bf16.msra.mxu1 %v3489_v41  ;;  %v3514_v58 = vld [vmem:[#allocation2 + $0xb4] ss:$8 sps:$4 sm:$0xff]   ;;  %v3516_v59 = vld [vmem:[#allocation2 + $0xb0] ss:$8 sps:$4 sm:$0xff]   ;;  %v3517_v60 = vld [vmem:[#allocation2 + $0xc4] ss:$8 sps:$4 sm:$0xff]  }
  0x84   : > { %3137 = vmatprep.subr.bf16.mxu0 %v3895_v0  ;;  %1123 = vmatprep.subr.bf16.mxu1 %v3490_v42  ;;  %v3519_v61 = vld [vmem:[#allocation2 + $0xc0] ss:$8 sps:$4 sm:$0xff]   ;;  %v3520_v62 = vld [vmem:[#allocation2 + $0xd4] ss:$8 sps:$4 sm:$0xff]   ;;  %v3522_v63 = vld [vmem:[#allocation2 + $0xd0] ss:$8 sps:$4 sm:$0xff]  }
  0x85   : > { %v3526_v2 = vld [vmem:[#allocation2 + $0xf4] ss:$8 sps:$4 sm:$0xff]   ;;  %v3528_v3 = vld [vmem:[#allocation2 + $0xf0] ss:$8 sps:$4 sm:$0xff]   ;;  %v3531_v4 = vld [vmem:[#allocation2 + $0x104] ss:$8 sps:$4 sm:$0xff]  }
  0x86   : > { %v1234_v8 = vld [vmem:[#allocation6 + $0x18] sm:$0xff]  ;;  %v1231_v9 = vld [vmem:[#allocation6] sm:$0xff]  ;;  %v1236_v13 = vld [vmem:[#allocation6 + $0x28] sm:$0xff] }
  0x87   : > { %3139 = vmatpush3.bf16.msra.mxu0 %v4119_v18  ;;  %1124 = vmatpush1.bf16.msra.mxu1 %v3492_v43  ;;  %v3149_v11 = vpack.c.bf16 %v1234_v8, %v1232_v6  ;;  %v1238_v14 = vld [vmem:[#allocation6 + $0x38] sm:$0xff]  ;;  %v3151_v16 = vpack.c.bf16 %v1233_v12, %v1231_v9  ;;  %v1235_v19 = vld [vmem:[#allocation6 + $0x20] sm:$0xff]  ;;  %v1237_v20 = vld [vmem:[#allocation6 + $0x30] sm:$0xff] }
  0x88   : > { %3140 = vmatprep.subr.bf16.mxu0 %v3895_v0  ;;  %1125 = vmatprep.subr.bf16.mxu1 %v3493_v44  ;;  %v3153_v17 = vpack.c.bf16 %v1238_v14, %v1236_v13  ;;  %v1240_v22 = vld [vmem:[#allocation6 + $0x48] sm:$0xff]  ;;  %v1239_v36 = vld [vmem:[#allocation6 + $0x40] sm:$0xff]  ;;  %v1241_v37 = vld [vmem:[#allocation6 + $0x50] sm:$0xff] }
  0x89   : > { %v1244_v38 = vld [vmem:[#allocation6 + $0x68] sm:$0xff]  ;;  %v1246_v39 = vld [vmem:[#allocation6 + $0x78] sm:$0xff]  ;;  %v3159_v43 = vpack.c.bf16 %v1241_v37, %v1239_v36 }
  0x8a   : > { %v3161_v44 = vpack.c.bf16 %v1246_v39, %v1244_v38  ;;  %v1259_v38 = vld [vmem:[#allocation6 + $0xe0] sm:$0xff]  ;;  %v1261_v39 = vld [vmem:[#allocation6 + $0xf0] sm:$0xff] }
  0x8b   : > { %3142 = vmatpush3.bf16.msra.mxu0 %v4124_v21  ;;  %1126 = vmatpush1.bf16.msra.mxu1 %v3495_v45  ;;  %v1243_v45 = vld [vmem:[#allocation6 + $0x60] sm:$0xff] }
  0x8c   : > { %3143 = vmatprep.subr.bf16.mxu0 %v3895_v0  ;;  %1127 = vmatprep.subr.bf16.mxu1 %v3496_v46  ;;  %v1245_v46 = vld [vmem:[#allocation6 + $0x70] sm:$0xff] }
  0x8f   : > { %3145 = vmatpush3.bf16.msra.mxu0 %v4133_v24  ;;  %1128 = vmatpush1.bf16.msra.mxu1 %v3498_v47  ;;  %v1248_v47 = vld [vmem:[#allocation6 + $0x88] sm:$0xff] }
  0x90   : > { %3146 = vmatprep.subr.bf16.mxu0 %v3895_v0  ;;  %1129 = vmatprep.subr.bf16.mxu1 %v3499_v48  ;;  %v3523_v0 = vld [vmem:[#allocation2 + $0xe4] ss:$8 sps:$4 sm:$0xff]   ;;  %v1250_v48 = vld [vmem:[#allocation6 + $0x98] sm:$0xff] }
  0x93   : > { %3148 = vmatpush3.bf16.msra.mxu0 %v4145_v26  ;;  %1130 = vmatpush1.bf16.msra.mxu1 %v3501_v49 }
  0x94   : > { %1131 = vmatprep.subr.bf16.mxu1 %v3502_v50  ;;  %3150 = vmatprep.subr.bf16.mxu0 %v3149_v11 }
  0x96   : > { %2939 = vmatmul.mubr.f32.vlgmr.msra.gmra.mrb[0].mxu0 %v548_v28  ;;  %v1242_v28 = vld [vmem:[#allocation6 + $0x58] sm:$0xff] }
  0x97   : > { %2941 = vmatprep.mubr.msk.f32.mxu0 %vm3896_vm0, %v3897_v1  ;;  %1132 = vmatpush1.bf16.msra.mxu1 %v3504_v51 }
  0x98   : > { %1133 = vmatprep.subr.bf16.mxu1 %v3505_v52  ;;  %3152 = vmatpush1.bf16.msra.mxu0 %v3151_v16  ;;  %v3163_v52 = vpack.c.bf16 %v1245_v46, %v1243_v45  ;;  %v3179_v46 = vpack.c.bf16 %v1261_v39, %v1259_v38 }
  0x99   : > { %3154 = vmatprep.subr.bf16.mxu0 %v3153_v17 }
  0x9a   : > { %2942 = vmatmul.mubr.f32.gmra.mrb[2].mxu0 %v549_v29 }
  0x9b   : > { %2944 = vmatprep.mubr.msk.f32.mxu0 %vm3896_vm0, %v3897_v1  ;;  %1134 = vmatpush1.bf16.msra.mxu1 %v3507_v53  ;;  %v3165_v53 = vpack.c.bf16 %v1250_v48, %v1248_v47 }
  0x9c   : > { %1135 = vmatprep.subr.bf16.mxu1 %v3508_v54  ;;  %v1247_v54 = vld [vmem:[#allocation6 + $0x80] sm:$0xff] }
  0x9e   : > { %2945 = vmatmul.mubr.f32.gmra.mrb[4].mxu0 %v550_v31 }
  0x9f   : > { %2947 = vmatprep.mubr.msk.f32.mxu0 %vm3896_vm0, %v3897_v1  ;;  %1136 = vmatpush1.bf16.msra.mxu1 %v3510_v55  ;;  %v1249_v55 = vld [vmem:[#allocation6 + $0x90] sm:$0xff] }
  0xa0   : > { %1137 = vmatprep.subr.bf16.mxu1 %v3511_v56  ;;  %v1252_v56 = vld [vmem:[#allocation6 + $0xa8] sm:$0xff] }
  0xa2   : > { %2948 = vmatmul.mubr.f32.gmra.mrb[6].mxu0 %v551_v33  ;;  %v3155_v33 = vpack.c.bf16 %v1237_v20, %v1235_v19  ;;  %v1255_v19 = vld [vmem:[#allocation6 + $0xc0] sm:$0xff]  ;;  %v1257_v20 = vld [vmem:[#allocation6 + $0xd0] sm:$0xff] }
  0xa3   : > { %2950 = vmatprep.mubr.msk.f32.mxu0 %vm3896_vm0, %v3897_v1  ;;  %1138 = vmatpush1.bf16.msra.mxu1 %v3513_v57  ;;  %v3525_v1 = vld [vmem:[#allocation2 + $0xe0] ss:$8 sps:$4 sm:$0xff]   ;;  %v1254_v57 = vld [vmem:[#allocation6 + $0xb8] sm:$0xff] }
  0xa4   : > { %1139 = vmatprep.subr.bf16.mxu1 %v3514_v58  ;;  %3156 = vmatpush1.bf16.msra.mxu0 %v3155_v33  ;;  %v3175_v33 = vpack.c.bf16 %v1257_v20, %v1255_v19  ;;  %v1271_v19 = vld [vmem:[#allocation6 + $0x140] sm:$0xff]  ;;  %v1273_v20 = vld [vmem:[#allocation6 + $0x150] sm:$0xff] }
  0xa6   : > { %2951 = vmatmul.mubr.f32.gmra.mrb[8].mxu0 %v552_v35  ;;  %v3157_v35 = vpack.c.bf16 %v1242_v28, %v1240_v22  ;;  %v1260_v22 = vld [vmem:[#allocation6 + $0xe8] sm:$0xff] }
  0xa7   : > { %1140 = vmatpush1.bf16.msra.mxu1 %v3516_v59 }
  0xa8   : > { %1141 = vmatprep.subr.bf16.mxu1 %v3517_v60  ;;  %3158 = vmatprep.subr.bf16.mxu0 %v3157_v35 }
  0xa9   : > { %3160 = vmatpush1.bf16.msra.mxu0 %v3159_v43 }
  0xaa   : > { %3162 = vmatprep.subr.bf16.mxu0 %v3161_v44 }
  0xab   : > { %1142 = vmatpush1.bf16.msra.mxu1 %v3519_v61 }
  0xac   : > { %1143 = vmatprep.subr.bf16.mxu1 %v3520_v62  ;;  %v3167_v62 = vpack.c.bf16 %v1249_v55, %v1247_v54  ;;  %v1270_v54 = vld [vmem:[#allocation6 + $0x138] sm:$0xff] }
  0xad   : > { %3164 = vmatpush1.bf16.msra.mxu0 %v3163_v52  ;;  %v1265_v52 = vld [vmem:[#allocation6 + $0x110] sm:$0xff] }
  0xae   : > { %3166 = vmatprep.subr.bf16.mxu0 %v3165_v53  ;;  %v1268_v53 = vld [vmem:[#allocation6 + $0x128] sm:$0xff] }
  0xaf   : > { %1144 = vmatpush1.bf16.msra.mxu1 %v3522_v63 }
  0xb0   : > { %1145 = vmatprep.subr.bf16.mxu1 %v3523_v0  ;;  %v3169_v0 = vpack.c.bf16 %v1254_v57, %v1252_v56 }
  0xb1   : > { %3168 = vmatpush1.bf16.msra.mxu0 %v3167_v62 }
  0xb2   : > { %3170 = vmatprep.subr.bf16.mxu0 %v3169_v0  ;;  %v1267_v0 = vld [vmem:[#allocation6 + $0x120] sm:$0xff] }
  0xb3   : > { %1146 = vmatpush1.bf16.msra.mxu1 %v3525_v1  ;;  %v1251_v1 = vld [vmem:[#allocation6 + $0xa0] sm:$0xff] }
  0xb4   : > { %1147 = vmatprep.subr.bf16.mxu1 %v3526_v2  ;;  %v1253_v2 = vld [vmem:[#allocation6 + $0xb0] sm:$0xff] }
  0xb5   : > { %v3171_v13 = vpack.c.bf16 %v1253_v2, %v1251_v1  ;;  %v1269_v1 = vld [vmem:[#allocation6 + $0x130] sm:$0xff]  ;;  %v1272_v2 = vld [vmem:[#allocation6 + $0x148] sm:$0xff] }
  0xb7   : > { %1148 = vmatpush1.bf16.msra.mxu1 %v3528_v3  ;;  %v1256_v3 = vld [vmem:[#allocation6 + $0xc8] sm:$0xff]  ;;  %3172 = vmatpush1.bf16.msra.mxu0 %v3171_v13  ;;  %v3187_v13 = vpack.c.bf16 %v1269_v1, %v1267_v0 }
  0xb8   : > { %1170 = vmatprep.subr.bf16.mxu1 %v3531_v4  ;;  %v1258_v4 = vld [vmem:[#allocation6 + $0xd8] sm:$0xff]  ;;  %v1284_v1 = vld [vmem:[#allocation6 + $0x1a8] sm:$0xff] }
  0xb9   : > { %v3173_v17 = vpack.c.bf16 %v1258_v4, %v1256_v3  ;;  %v1274_v3 = vld [vmem:[#allocation6 + $0x158] sm:$0xff] }
  0xbb   : > { %3174 = vmatprep.subr.bf16.mxu0 %v3173_v17  ;;  %v3189_v17 = vpack.c.bf16 %v1274_v3, %v1272_v2  ;;  %v1286_v2 = vld [vmem:[#allocation6 + $0x1b8] sm:$0xff] }
  0xbc   : > { %3176 = vmatpush1.bf16.msra.mxu0 %v3175_v33 }
 0x169   : > { %v635_v23 = vpop.f32.mrb[0].mxu0 }
 0x16a   : > { %v659_v29 = vmax.f32 %v635_v23, 1e-30  ;;  %v2940_v31 = vpop.f32.mrb[1].mxu0 }
 0x16c   : > { %3585 = vrsqrt.f32 %v659_v29 }
 0x16d   : > { %v4178_v40 = vpop.f32.mrb[2].mxu0 }
 0x16e   : > { %v660_v41 = vmax.f32 %v4178_v40, 1e-30  ;;  %v2943_v42 = vpop.f32.mrb[3].mxu0 }
 0x16f   : > { %v1266_v42 = vld [vmem:[#allocation6 + $0x118] sm:$0xff] }
 0x170   : > { %3587 = vrsqrt.f32 %v660_v41  ;;  %v1264_v41 = vld [vmem:[#allocation6 + $0x108] sm:$0xff] }
 0x171   : > { %v4181_v49 = vpop.f32.mrb[4].mxu0 }
 0x172   : > { %v661_v50 = vmax.f32 %v4181_v49, 1e-30  ;;  %v2946_v51 = vpop.f32.mrb[5].mxu0 }
 0x173   : > { %v1263_v51 = vld [vmem:[#allocation6 + $0x100] sm:$0xff] }
 0x174   : > { %3589 = vrsqrt.f32 %v661_v50  ;;  %v3181_v50 = vpack.c.bf16 %v1266_v42, %v1264_v41  ;;  %v1275_v41 = vld [vmem:[#allocation6 + $0x160] sm:$0xff]  ;;  %v1277_v42 = vld [vmem:[#allocation6 + $0x170] sm:$0xff] }
 0x175   : > { %v4184_v58 = vpop.f32.mrb[6].mxu0 }
 0x176   : > { %v4186_v59 = vpop.eup %3585  ;;  %v662_v60 = vmax.f32 %v4184_v58, 1e-30  ;;  %v2949_v61 = vpop.f32.mrb[7].mxu0 }
 0x177   : > { %v669_v63 = vmul.f32 %v4186_v59, %v635_v23  ;;  %v1262_v23 = vld [vmem:[#allocation6 + $0xf8] sm:$0xff] }
 0x178   : > { %3591 = vrsqrt.f32 %v662_v60  ;;  %v3177_v37 = vpack.c.bf16 %v1262_v23, %v1260_v22  ;;  %v3183_v60 = vpack.c.bf16 %v1265_v52, %v1263_v51  ;;  %v1276_v23 = vld [vmem:[#allocation6 + $0x168] sm:$0xff]  ;;  %v1282_v51 = vld [vmem:[#allocation6 + $0x198] sm:$0xff] }
 0x179   : > { %v674_v6 = vmax.f32 %v669_v63, 0.0  ;;  %v4190_v8 = vpop.f32.mrb[8].mxu0  ;;  %v3185_v63 = vpack.c.bf16 %v1270_v54, %v1268_v53  ;;  %v3195_v53 = vpack.c.bf16 %v1277_v42, %v1275_v41 }
 0x17a   : > { %v4192_v9 = vpop.eup %3587  ;;  %v663_v11 = vmax.f32 %v4190_v8, 1e-30  ;;  %v2952_v12 = vpop.f32.mrb[9].mxu0  ;;  %3178 = vmatprep.subr.bf16.mxu0 %v3177_v37 }
 0x17b   : > { %v4195_v14 = vmin.f32 %v674_v6, 0.9999999  ;;  %v670_v16 = vmul.f32 %v4192_v9, %v4178_v40  ;;  %3180 = vmatpush1.bf16.msra.mxu0 %v3179_v46 }
 0x17c   : > { %3593 = vrsqrt.f32 %v663_v11  ;;  %3182 = vmatprep.subr.bf16.mxu0 %v3181_v50  ;;  %v1280_v50 = vld [vmem:[#allocation6 + $0x188] sm:$0xff] }
 0x17d   : > { %v689_v28 = vsub.f32 1.0, %v4195_v14  ;;  %v675_v29 = vmax.f32 %v670_v16, 0.0  ;;  %v684_v37 = vadd.f32 1.0, %v4195_v14 }
 0x17e   : > { %v4200_v31 = vpop.eup %3589 }
 0x17f   : > { %3595 = vrcp.f32 %v689_v28  ;;  %v4202_v35 = vmin.f32 %v675_v29, 0.9999999  ;;  %v671_v36 = vmul.f32 %v4200_v31, %v4181_v49  ;;  %3184 = vmatpush1.bf16.msra.mxu0 %v3183_v60  ;;  %v1278_v29 = vld [vmem:[#allocation6 + $0x178] sm:$0xff]  ;;  %v1281_v60 = vld [vmem:[#allocation6 + $0x190] sm:$0xff] }
 0x180   : > { %3186 = vmatprep.subr.bf16.mxu0 %v3185_v63 }
 0x181   : > { %v690_v43 = vsub.f32 1.0, %v4202_v35  ;;  %v676_v44 = vmax.f32 %v671_v36, 0.0  ;;  %v685_v54 = vadd.f32 1.0, %v4202_v35  ;;  %v1283_v35 = vld [vmem:[#allocation6 + $0x1a0] sm:$0xff] }
 0x182   : > { %v4207_v45 = vpop.eup %3591 }
 0x183   : > { %3597 = vrcp.f32 %v690_v43  ;;  %v4209_v47 = vmin.f32 %v676_v44, 0.9999999  ;;  %v672_v48 = vmul.f32 %v4207_v45, %v4184_v58  ;;  %3188 = vmatpush1.bf16.msra.mxu0 %v3187_v13  ;;  %v3193_v44 = vpack.c.bf16 %v1278_v29, %v1276_v23  ;;  %v1290_v23 = vld [vmem:[#allocation6 + $0x1d8] sm:$0xff] }
 0x184   : > { %3190 = vmatprep.subr.bf16.mxu0 %v3189_v17  ;;  %v1285_v17 = vld [vmem:[#allocation6 + $0x1b0] sm:$0xff] }
 0x185   : > { %v691_v55 = vsub.f32 1.0, %v4209_v47  ;;  %v677_v56 = vmax.f32 %v672_v48, 0.0 }
 0x186   : > { %v4214_v57 = vpop.eup %3593 }
 0x187   : > { %3599 = vrcp.f32 %v691_v55  ;;  %v4216_v61 = vmin.f32 %v677_v56, 0.9999999  ;;  %v673_v62 = vmul.f32 %v4214_v57, %v4190_v8 }
 0x189   : > { %v3596_v4 = vpop.eup %3595  ;;  %v692_v6 = vsub.f32 1.0, %v4216_v61  ;;  %v678_v11 = vmax.f32 %v673_v62, 0.0  ;;  %v3197_v62 = vpack.c.bf16 %v1282_v51, %v1280_v50 }
 0x18a   : > { %v699_v12 = vmul.f32 %v3596_v4, %v689_v28  ;;  %v3191_v28 = vpack.c.bf16 %v1273_v20, %v1271_v19 }
 0x18b   : > { %3601 = vrcp.f32 %v692_v6  ;;  %v4221_v16 = vmin.f32 %v678_v11, 0.9999999  ;;  %v686_v11 = vadd.f32 1.0, %v4209_v47 }
 0x18c   : > { %v704_v22 = vsub.f32 2.0, %v699_v12  ;;  %3192 = vmatpush1.bf16.msra.mxu0 %v3191_v28 }
 0x18d   : > { %v3598_v33 = vpop.eup %3597  ;;  %v693_v36 = vsub.f32 1.0, %v4221_v16  ;;  %3194 = vmatprep.subr.bf16.mxu0 %v3193_v44  ;;  %v688_v44 = vadd.f32 1.0, %v4221_v16 }
 0x18e   : > { %v709_v38 = vmul.f32 %v3596_v4, %v704_v22  ;;  %v700_v39 = vmul.f32 %v3598_v33, %v690_v43  ;;  %v1279_v43 = vld [vmem:[#allocation6 + $0x180] sm:$0xff]  ;;  %v1288_v22 = vld [vmem:[#allocation6 + $0x1c8] sm:$0xff] }
 0x18f   : > { %3603 = vrcp.f32 %v693_v36  ;;  %v3199_v4 = vpack.c.bf16 %v1281_v60, %v1279_v43  ;;  %v3205_v47 = vpack.c.bf16 %v1290_v23, %v1288_v22 }
 0x190   : > { %v714_v46 = vmul.f32 %v709_v38, %v684_v37  ;;  %v705_v48 = vsub.f32 2.0, %v700_v39  ;;  %3196 = vmatpush1.bf16.msra.mxu0 %v3195_v53  ;;  %v687_v37 = vadd.f32 1.0, %v4216_v61 }
 0x191   : > { %v3600_v52 = vpop.eup %3599  ;;  %3198 = vmatprep.subr.bf16.mxu0 %v3197_v62 }
 0x192   : > { %3605 = vlog2.f32 %v714_v46  ;;  %v710_v56 = vmul.f32 %v3598_v33, %v705_v48  ;;  %v701_v14 = vmul.f32 %v3600_v52, %v691_v55  ;;  %v3201_v55 = vpack.c.bf16 %v1286_v2, %v1284_v1 }
 0x193   : > { %v3203_v33 = vpack.c.bf16 %v1285_v17, %v1283_v35 }
 0x194   : > { %v715_v63 = vmul.f32 %v710_v56, %v685_v54  ;;  %v706_v0 = vsub.f32 2.0, %v701_v14  ;;  %3200 = vmatpush1.bf16.msra.mxu0 %v3199_v4 }
 0x195   : > { %v3602_v3 = vpop.eup %3601  ;;  %3202 = vmatprep.subr.bf16.mxu0 %v3201_v55 }
 0x196   : > { %3607 = vlog2.f32 %v715_v63  ;;  %v711_v12 = vmul.f32 %v3600_v52, %v706_v0  ;;  %v702_v13 = vmul.f32 %v3602_v3, %v692_v6 }
 0x198   : > { %v716_v19 = vmul.f32 %v711_v12, %v686_v11  ;;  %v707_v20 = vsub.f32 2.0, %v702_v13  ;;  %3204 = vmatpush1.bf16.msra.mxu0 %v3203_v33 }
 0x199   : > { %v3604_v29 = vpop.eup %3603  ;;  %3206 = vmatprep.subr.bf16.mxu0 %v3205_v47 }
 0x19a   : > { %3609 = vlog2.f32 %v716_v19  ;;  %v712_v38 = vmul.f32 %v3602_v3, %v707_v20  ;;  %v703_v39 = vmul.f32 %v3604_v29, %v693_v36 }
 0x19c   : > { %v3606_v6 = vpop.eup %3605  ;;  %v717_v28 = vmul.f32 %v712_v38, %v687_v37  ;;  %v708_v41 = vsub.f32 2.0, %v703_v39 }
 0x19d   : > { %v720_v42 = vmul.f32 0.6931472, %v3606_v6 }
 0x19e   : > { %3611 = vlog2.f32 %v717_v28  ;;  %v713_v46 = vmul.f32 %v3604_v29, %v708_v41 }
 0x19f   : > { %v729_v48 = vmul.f32 0.5, %v720_v42 }
 0x1a0   : > { %v3608_v50 = vpop.eup %3607  ;;  %v718_v51 = vmul.f32 %v713_v46, %v688_v44 }
 0x1a1   : > { %v734_v61 = vmul.f32 %v4186_v59, %v729_v48  ;;  %v722_v52 = vmul.f32 0.6931472, %v3608_v50 }
 0x1a2   : > { %3613 = vlog2.f32 %v718_v51 }
 0x1a3   : > { %v730_v36 = vmul.f32 0.5, %v722_v52  ;;  %v739_v54 = vmul.f32 %v4135_v25, %v734_v61 }
 0x1a4   : > { %v3610_v53 = vpop.eup %3609 }
 0x1a5   : > { %v735_v56 = vmul.f32 %v4192_v9, %v730_v36  ;;  %v724_v14 = vmul.f32 0.6931472, %v3610_v53  ;;  %v750_v62 = vrot.slane %v739_v54, 2 }
 0x1a7   : > { %v731_v43 = vmul.f32 0.5, %v724_v14  ;;  %v740_v16 = vmul.f32 %v735_v56, %v4148_v27  ;;  %v3529_v56 = vld [vmem:[#allocation2 + $0x100] ss:$8 sps:$4 sm:$0xff]  }
 0x1a8   : > { %v3612_v60 = vpop.eup %3611 }
 0x1a9   : > { %v736_v63 = vmul.f32 %v4200_v31, %v731_v43  ;;  %v726_v0 = vmul.f32 0.6931472, %v3612_v60  ;;  %v751_v1 = vrot.slane %v740_v16, 2  ;;  %v777_v59 = vpack.c.bf16 %v740_v16, %v739_v54 }
 0x1aa   : > { %v765_v9 = vrot.slane %v740_v16, 4  ;;  %v3534_v16 = vld [vmem:[#allocation2 + $0x114] ss:$8 sps:$4 sm:$0xff]  }
 0x1ab   : > { %v732_v2 = vmul.f32 0.5, %v726_v0  ;;  %v741_v3 = vmul.f32 %v736_v63, %v4158_v30  ;;  %v752_v4 = vsel %vm749_vm1, %v750_v62, %v751_v1  ;;  %v856_v33 = vrot.slane %v777_v59, 2  ;;  %v3532_v63 = vld [vmem:[#allocation2 + $0x110] ss:$8 sps:$4 sm:$0xff]   ;;  %v3537_v0 = vld [vmem:[#allocation2 + $0x124] ss:$8 sps:$4 sm:$0xff]  }
 0x1ac   : > { %v3614_v25 = vpop.eup %3613  ;;  %v3540_v59 = vld [vmem:[#allocation2 + $0x134] ss:$8 sps:$4 sm:$0xff]  }
 0x1ad   : > { %v737_v11 = vmul.f32 %v4207_v45, %v732_v2  ;;  %v728_v12 = vmul.f32 0.6931472, %v3614_v25  ;;  %v753_v27 = vrot.slane %v741_v3, 2  ;;  %v766_v13 = vrot.slane %v741_v3, 4  ;;  %v3538_v2 = vld [vmem:[#allocation2 + $0x130] ss:$8 sps:$4 sm:$0xff]  }
 0x1ae   : > { %v3541_v25 = vld [vmem:[#allocation2 + $0x140] ss:$8 sps:$4 sm:$0xff]  }
 0x1af   : > { %v733_v35 = vmul.f32 0.5, %v728_v12  ;;  %v742_v17 = vmul.f32 %v737_v11, %v4165_v32  ;;  %v754_v31 = vsel %vm749_vm1, %v751_v1, %v753_v27  ;;  %v767_v55 = vsel %vm764_vm2, %v765_v9, %v766_v13  ;;  %v3535_v1 = vld [vmem:[#allocation2 + $0x120] ss:$8 sps:$4 sm:$0xff]   ;;  %v3544_v11 = vld [vmem:[#allocation2 + $0x150] ss:$8 sps:$4 sm:$0xff]  }
 0x1b0   : > { %v778_v19 = vpack.c.bf16 %v754_v31, %v752_v4  ;;  %v779_v20 = vpack.c.bf16 %v767_v55, %v765_v9  ;;  %v3543_v4 = vld [vmem:[#allocation2 + $0x144] ss:$8 sps:$4 sm:$0xff]   ;;  %v3546_v9 = vld [vmem:[#allocation2 + $0x154] ss:$8 sps:$4 sm:$0xff]  }
 0x1b1   : > { %v738_v30 = vmul.f32 %v4214_v57, %v733_v35  ;;  %v755_v22 = vrot.slane %v742_v17, 2  ;;  %v780_v23 = vpack.c.bf16 %v742_v17, %v741_v3  ;;  %v768_v29 = vrot.slane %v742_v17, 4  ;;  %v3549_v12 = vld [vmem:[#allocation2 + $0x164] ss:$8 sps:$4 sm:$0xff]   ;;  %v3550_v35 = vld [vmem:[#allocation2 + $0x170] ss:$8 sps:$4 sm:$0xff]  }
 0x1b2   : > { %v862_v36 = vrot.slane %v779_v20, 2  ;;  %v3898_v3 = vmov 0   ;;  %v1287_v17 = vld [vmem:[#allocation6 + $0x1c0] sm:$0xff]  ;;  %v1289_v31 = vld [vmem:[#allocation6 + $0x1d0] sm:$0xff]  ;;  %v1294_v20 = vld [vmem:[#allocation6 + $0x1f8] sm:$0xff] }
 0x1b3   : > { %v743_v45 = vmul.f32 %v738_v30, %v4172_v34  ;;  %v756_v37 = vsel %vm749_vm1, %v753_v27, %v755_v22  ;;  %v857_v38 = vrot.slane %v780_v23, 2  ;;  %v769_v39 = vsel %vm764_vm2, %v766_v13, %v768_v29  ;;  %v3547_v27 = vld [vmem:[#allocation2 + $0x160] ss:$8 sps:$4 sm:$0xff]   ;;  %v3552_v13 = vld [vmem:[#allocation2 + $0x174] ss:$8 sps:$4 sm:$0xff]  }
 0x1b4   : > { %v859_v34 = vrot.slane %v778_v19, 2  ;;  %v3207_v55 = vpack.c.bf16 %v1289_v31, %v1287_v17  ;;  %v1292_v19 = vld [vmem:[#allocation6 + $0x1e8] sm:$0xff]  ;;  %v1293_v23 = vld [vmem:[#allocation6 + $0x1f0] sm:$0xff] }
 0x1b5   : > { %v757_v32 = vrot.slane %v743_v45, 2  ;;  %v858_v47 = vsel %vm749_vm1, %v856_v33, %v857_v38  ;;  %v783_v6 = vpack.c.bf16 %v743_v45, %v743_v45  ;;  %v770_v28 = vrot.slane %v743_v45, 4 }
 0x1b6   : > { %3208 = vmatpush1.bf16.msra.mxu0 %v3207_v55  ;;  %v3209_v30 = vpack.c.bf16 %v1294_v20, %v1292_v19  ;;  %v836_v33 = vlaneseq }
 0x1b7   : > { %v758_v41 = vsel %vm749_vm1, %v755_v22, %v757_v32  ;;  %v784_v42 = vpack.c.bf16 %v757_v32, %v757_v32  ;;  %v865_v57 = vrot.slane %v783_v6, 2  ;;  %v771_v44 = vsel %vm764_vm2, %v768_v29, %v770_v28  ;;  %v1291_v22 = vld [vmem:[#allocation6 + $0x1e0] sm:$0xff] }
 0x1b8   : > { %v781_v46 = vpack.c.bf16 %v758_v41, %v756_v37  ;;  %v782_v48 = vpack.c.bf16 %v771_v44, %v769_v39  ;;  %v785_v50 = vpack.c.bf16 %v770_v28, %v770_v28  ;;  %v3211_v29 = vpack.c.bf16 %v1293_v23, %v1291_v22  ;;  %3210 = vmatprep.subr.bf16.mxu0 %v3209_v30 }
 0x1b9   : > { %v867_v51 = vrot.slane %v784_v42, 2  ;;  %v866_v61 = vsel %vm749_vm1, %v857_v38, %v865_v57  ;;  %v4272_v45 = vshrl.u32 %v836_v33, 7  ;;  %v834_v38 = vld [vmem:[%s4686_s3] sm:$0x3] }
 0x1ba   : > { %v860_v52 = vrot.slane %v781_v46, 2  ;;  %v863_v53 = vrot.slane %v782_v48, 2  ;;  %v869_v54 = vrot.slane %v785_v50, 2  ;;  %3212 = vmatpush1.bf16.msra.mxu0 %v3211_v29 }
 0x1bb   : > { %3214 = vmatprep.subr.bf16.mxu0 %v4105_v5  ;;  %v838_v37 = vsub.s32 0, %v4272_v45  ;;  %v842_v39 = vsub.s32 1, %v4272_v45 }
 0x1bc   : > { %v861_v14 = vsel %vm749_vm1, %v859_v34, %v860_v52  ;;  %v868_v43 = vsel %vm749_vm1, %v860_v52, %v867_v51  ;;  %v864_v60 = vsel %vm749_vm1, %v862_v36, %v863_v53  ;;  %v870_v62 = vsel %vm749_vm1, %v863_v53, %v869_v54 }
 0x1bd   : > { %1149 = vmatprep.mubr.bf16.mxu1 %v861_v14  ;;  %v839_v32 = vrot.slane %v834_v38, %v838_v37 }
 0x1be   : > { %1150 = vmatmul.mubr.bf16.vlgmr.msra.gmra.mrb[0].mxu1 %v858_v47  ;;  %v843_v47 = vrot.slane %v834_v38, %v842_v39 }
 0x1bf   : > { %1171 = vmatpush1.bf16.msra.mxu1 %v3529_v56  ;;  %1159 = vmatprep.mubr.bf16.mxu1 %v868_v43 }
 0x1c0   : > { %1172 = vmatprep.subr.bf16.mxu1 %v3534_v16 }
 0x1c3   : > { %1173 = vmatpush1.bf16.msra.mxu1 %v3532_v63 }
 0x1c4   : > { %1174 = vmatprep.subr.bf16.mxu1 %v3537_v0 }
 0x1c6   : > { %1160 = vmatmul.mubr.bf16.gmra.mrb[4].mxu1 %v866_v61 }
 0x1c7   : > { %1175 = vmatpush1.bf16.msra.mxu1 %v3535_v1  ;;  %1202 = vmatprep.mubr.bf16.mxu1 %v3898_v3 }
 0x1c8   : > { %1176 = vmatprep.subr.bf16.mxu1 %v3540_v59 }
 0x1cb   : > { %1177 = vmatpush1.bf16.msra.mxu1 %v3538_v2 }
 0x1cc   : > { %1178 = vmatprep.subr.bf16.mxu1 %v3543_v4 }
 0x1cf   : > { %1179 = vmatpush1.bf16.msra.mxu1 %v3541_v25 }
 0x1d0   : > { %1180 = vmatprep.subr.bf16.mxu1 %v3546_v9 }
 0x1d3   : > { %1181 = vmatpush1.bf16.msra.mxu1 %v3544_v11 }
 0x1d4   : > { %1182 = vmatprep.subr.bf16.mxu1 %v3549_v12 }
 0x1d7   : > { %1183 = vmatpush1.bf16.msra.mxu1 %v3547_v27 }
 0x1d8   : > { %1184 = vmatprep.subr.bf16.mxu1 %v3552_v13 }
 0x1db   : > { %1185 = vmatpush1.bf16.msra.mxu1 %v3550_v35 }
 0x1dc   : > { %3246 = vmatprep.subr.bf16.mxu1 %v4105_v5 }
 0x1de   : > { %1203 = vmatmul.mubr.bf16.vlgmr.msra.gmra.mrb[0].mxu1 %v864_v60 }
 0x1df   : > { %1212 = vmatprep.mubr.bf16.mxu1 %v3898_v3  ;;  %3248 = vmatpush3.bf16.msra.mxu1 %v4105_v5 }
 0x1e0   : > { %3250 = vmatprep.subr.bf16.mxu1 %v4110_v7 }
 0x1e3   : > { %3252 = vmatpush3.bf16.msra.mxu1 %v4110_v7 }
 0x1e4   : > { %3254 = vmatprep.subr.bf16.mxu1 %v4113_v10 }
 0x1e6   : > { %1213 = vmatmul.mubr.bf16.gmra.mrb[4].mxu1 %v870_v62 }
 0x1e7   : > { %3256 = vmatpush3.bf16.msra.mxu1 %v4113_v10 }
 0x1e8   : > { %3258 = vmatprep.subr.bf16.mxu1 %v4116_v15 }
 0x1eb   : > { %3260 = vmatpush3.bf16.msra.mxu1 %v4116_v15 }
 0x1ec   : > { %3262 = vmatprep.subr.bf16.mxu1 %v4119_v18 }
 0x1ef   : > { %3264 = vmatpush3.bf16.msra.mxu1 %v4119_v18 }
 0x1f0   : > { %3266 = vmatprep.subr.bf16.mxu1 %v4124_v21 }
 0x1f3   : > { %3268 = vmatpush3.bf16.msra.mxu1 %v4124_v21 }
 0x1f4   : > { %3270 = vmatprep.subr.bf16.mxu1 %v4133_v24 }
 0x1f7   : > { %3272 = vmatpush3.bf16.msra.mxu1 %v4133_v24 }
 0x1f8   : > { %3274 = vmatprep.subr.bf16.mxu1 %v4145_v26 }
 0x1fb   : > { %3276 = vmatpush3.bf16.msra.mxu1 %v4145_v26 }
 0x1fc   : > { %3278 = vmatprep.subr.bf16.mxu1 %v4105_v5 }
 0x2b1   : > { %v1204_v6 = vpop.f32.mrb[0].mxu1 }
 0x2b2   : > { %v4283_v28 = vadd.f32 %v1204_v6, %v839_v32  ;;  %v1206_v41 = vpop.f32.mrb[1].mxu1 }
 0x2b3   : > { %v4285_v42 = vadd.f32 %v1206_v41, %v843_v47  ;;  %v1208_v57 = vpop.f32.mrb[2].mxu1 }
 0x2b4   : > { %v1210_v44 = vpop.f32.mrb[3].mxu1  ;;  %v1223_v50 = vmul.f32 %v4283_v28, %v4283_v28  ;;  %v4293_v34 = vadd.f32 %v1208_v57, %v839_v32 }
 0x2b5   : > { %v4287_v46 = vadd.f32 %v1210_v44, %v843_v47  ;;  %v1224_v48 = vmul.f32 %v4285_v42, %v4285_v42 }
 0x2b6   : > { %v1225_v53 = vmul.f32 %v4293_v34, %v4293_v34 }
 0x2b7   : > { %1359 = vmatprep.mubr.f32.mxu0 %v1224_v48  ;;  %v1226_v51 = vmul.f32 %v4287_v46, %v4287_v46 }
 0x2b8   : > { %1360 = vmatmul.mubr.f32.vlgmr.msra.gmra.mrb[10].mxu0 %v1223_v50 }
 0x2b9   : > { %v1214_v61 = vpop.f32.mrb[4].mxu1  ;;  %1365 = vmatprep.mubr.f32.mxu0 %v1226_v51  ;;  %3216 = vmatpush3.bf16.msra.mxu0 %v4105_v5 }
 0x2ba   : > { %v4298_v52 = vadd.f32 %v1214_v61, %v839_v32  ;;  %v1216_v36 = vpop.f32.mrb[5].mxu1  ;;  %3218 = vmatprep.subr.bf16.mxu0 %v4110_v7 }
 0x2bb   : > { %v4303_v54 = vadd.f32 %v1216_v36, %v843_v47  ;;  %v1218_v56 = vpop.f32.mrb[6].mxu1 }
 0x2bc   : > { %v1220_v14 = vpop.f32.mrb[7].mxu1  ;;  %1366 = vmatmul.mubr.f32.gmra.mrb[12].mxu0 %v1225_v53  ;;  %v3411_v60 = vadd.f32 %v1218_v56, %v839_v32  ;;  %v1227_v62 = vmul.f32 %v4298_v52, %v4298_v52 }
 0x2bd   : > { %v4305_v43 = vadd.f32 %v1220_v14, %v843_v47  ;;  %v1228_v16 = vmul.f32 %v4303_v54, %v4303_v54  ;;  %3220 = vmatpush3.bf16.msra.mxu0 %v4110_v7 }
 0x2be   : > { %3222 = vmatprep.subr.bf16.mxu0 %v4113_v10  ;;  %v1229_v0 = vmul.f32 %v3411_v60, %v3411_v60 }
 0x2bf   : > { %1371 = vmatprep.mubr.f32.mxu0 %v1228_v16  ;;  %v1230_v63 = vmul.f32 %v4305_v43, %v4305_v43 }
 0x2c0   : > { %1372 = vmatmul.mubr.f32.gmra.mrb[14].mxu0 %v1227_v62 }
 0x2c1   : > { %1377 = vmatprep.mubr.f32.mxu0 %v1230_v63  ;;  %3224 = vmatpush3.bf16.msra.mxu0 %v4113_v10 }
 0x2c2   : > { %3226 = vmatprep.subr.bf16.mxu0 %v4116_v15 }
 0x2c4   : > { %1378 = vmatmul.mubr.f32.gmra.mrb[16].mxu0 %v1229_v0 }
 0x2c5   : > { %3228 = vmatpush3.bf16.msra.mxu0 %v4116_v15 }
 0x2c6   : > { %3230 = vmatprep.subr.bf16.mxu0 %v4119_v18 }
 0x2c9   : > { %3232 = vmatpush3.bf16.msra.mxu0 %v4119_v18 }
 0x2ca   : > { %3234 = vmatprep.subr.bf16.mxu0 %v4124_v21 }
 0x2cd   : > { %3236 = vmatpush3.bf16.msra.mxu0 %v4124_v21 }
 0x2ce   : > { %3238 = vmatprep.subr.bf16.mxu0 %v4133_v24 }
 0x2d1   : > { %3240 = vmatpush3.bf16.msra.mxu0 %v4133_v24 }
 0x2d2   : > { %3242 = vmatprep.subr.bf16.mxu0 %v4145_v26 }
 0x2d5   : > { %3244 = vmatpush3.bf16.msra.mxu0 %v4145_v26 }
 0x38b   : > { %v1361_v1 = vpop.f32.mrb[10].mxu0 }
 0x38c   : > { %v1384_v59 = vmax.f32 %v1361_v1, 1e-30  ;;  %v4326_v2 = vpop.f32.mrb[11].mxu0  ;;  %vm1400_vm3 = vcmp.gt.f32.partialorder %v1361_v1, 9.649118 }
 0x38d   : > { %v1385_v56 = vmax.f32 %v4326_v2, 1e-30  ;;  %vm1401_vm8 = vcmp.gt.f32.partialorder %v4326_v2, 9.649118 }
 0x38e   : > { %3615 = vrsqrt.f32 %v1384_v59 }
 0x38f   : > { %v1367_v4 = vpop.f32.mrb[12].mxu0 }
 0x390   : > { %v1386_v25 = vmax.f32 %v1367_v4, 1e-30  ;;  %v4328_v9 = vpop.f32.mrb[13].mxu0  ;;  %vm1402_vm4 = vcmp.gt.f32.partialorder %v1367_v4, 9.649118 }
 0x391   : > { %v1387_v53 = vmax.f32 %v4328_v9, 1e-30  ;;  %vm1403_vm7 = vcmp.gt.f32.partialorder %v4328_v9, 9.649118 }
 0x392   : > { %3617 = vrsqrt.f32 %v1386_v25 }
 0x393   : > { %v1373_v11 = vpop.f32.mrb[14].mxu0 }
 0x394   : > { %v1388_v12 = vmax.f32 %v1373_v11, 1e-30  ;;  %v4330_v27 = vpop.f32.mrb[15].mxu0  ;;  %vm1404_vm5 = vcmp.gt.f32.partialorder %v1373_v11, 9.649118 }
 0x395   : > { %v1389_v16 = vmax.f32 %v4330_v27, 1e-30  ;;  %vm1405_vm10 = vcmp.gt.f32.partialorder %v4330_v27, 9.649118 }
 0x396   : > { %3619 = vrsqrt.f32 %v1388_v12 }
 0x397   : > { %v1379_v13 = vpop.f32.mrb[16].mxu0 }
 0x398   : > { %v3616_v35 = vpop.eup %3615  ;;  %v1390_v17 = vmax.f32 %v1379_v13, 1e-30  ;;  %v4332_v31 = vpop.f32.mrb[17].mxu0  ;;  %vm1406_vm6 = vcmp.gt.f32.partialorder %v1379_v13, 9.649118 }
 0x399   : > { %v1408_v55 = vmul.f32 3.106303, %v3616_v35  ;;  %v1391_v14 = vmax.f32 %v4332_v31, 1e-30  ;;  %vm1407_vm9 = vcmp.gt.f32.partialorder %v4332_v31, 9.649118 }
 0x39a   : > { %3621 = vrsqrt.f32 %v1390_v17 }
 0x39b   : > { %v1416_v19 = vmul.f32 %v4283_v28, %v1408_v55 }
 0x39c   : > { %v3618_v20 = vpop.eup %3617 }
 0x39d   : > { %v1424_v30 = vsel %vm1400_vm3, %v1416_v19, %v4283_v28  ;;  %v1410_v22 = vmul.f32 3.106303, %v3618_v20 }
 0x39e   : > { %3623 = vtanh.f32 %v1424_v30 }
 0x39f   : > { %v1418_v23 = vmul.f32 %v4293_v34, %v1410_v22 }
 0x3a0   : > { %v3620_v29 = vpop.eup %3619 }
 0x3a1   : > { %v1426_v33 = vsel %vm1402_vm4, %v1418_v23, %v4293_v34  ;;  %v1412_v38 = vmul.f32 3.106303, %v3620_v29 }
 0x3a2   : > { %3625 = vtanh.f32 %v1426_v33 }
 0x3a3   : > { %v1420_v32 = vmul.f32 %v4298_v52, %v1412_v38 }
 0x3a4   : > { %v3622_v47 = vpop.eup %3621 }
 0x3a5   : > { %v1428_v6 = vsel %vm1404_vm5, %v1420_v32, %v4298_v52  ;;  %v1414_v41 = vmul.f32 3.106303, %v3622_v47 }
 0x3a6   : > { %3627 = vtanh.f32 %v1428_v6 }
 0x3a7   : > { %v1422_v57 = vmul.f32 %v3411_v60, %v1414_v41 }
 0x3a8   : > { %v4340_v28 = vpop.eup %3623 }
 0x3a9   : > { %v1430_v44 = vsel %vm1406_vm6, %v1422_v57, %v3411_v60  ;;  %v1436_v48 = vmul.f32 %v4340_v28, %v4340_v28 }
 0x3aa   : > { %3629 = vtanh.f32 %v1430_v44 }
 0x3ab   : > { %2985 = vmatprep.mubr.f32.mxu0 %v1436_v48  ;;  %3631 = vrsqrt.f32 %v1387_v53 }
 0x3ac   : > { %v4344_v50 = vpop.eup %3625  ;;  %3633 = vrsqrt.f32 %v1385_v56 }
 0x3ad   : > { %v1437_v34 = vmul.f32 %v4344_v50, %v4344_v50  ;;  %3635 = vrsqrt.f32 %v1391_v14 }
 0x3ae   : > { %3637 = vrsqrt.f32 %v1389_v16 }
 0x3af   : > { %2986 = vmatmul.mubr.f32.vlgmr.msra.gmra.mrb[18].mxu0 %v1437_v34 }
 0x3b0   : > { %v4348_v51 = vpop.eup %3627 }
 0x3b1   : > { %v1438_v61 = vmul.f32 %v4348_v51, %v4348_v51 }
 0x3b3   : > { %2988 = vmatprep.mubr.f32.mxu0 %v1438_v61 }
 0x3b4   : > { %v4352_v52 = vpop.eup %3629 }
 0x3b5   : > { %v1439_v36 = vmul.f32 %v4352_v52, %v4352_v52  ;;  %v3632_v60 = vpop.eup %3631 }
 0x3b6   : > { %v3634_v62 = vpop.eup %3633  ;;  %v1411_v63 = vmul.f32 3.106303, %v3632_v60 }
 0x3b7   : > { %2989 = vmatmul.mubr.f32.gmra.mrb[20].mxu0 %v1439_v36  ;;  %v1409_v0 = vmul.f32 3.106303, %v3634_v62  ;;  %v3636_v59 = vpop.eup %3635 }
 0x3b8   : > { %v1419_v1 = vmul.f32 %v4287_v46, %v1411_v63  ;;  %v3638_v25 = vpop.eup %3637  ;;  %v1415_v12 = vmul.f32 3.106303, %v3636_v59 }
 0x3b9   : > { %v1417_v4 = vmul.f32 %v4285_v42, %v1409_v0  ;;  %v1413_v35 = vmul.f32 3.106303, %v3638_v25 }
 0x3ba   : > { %v1427_v11 = vsel %vm1403_vm7, %v1419_v1, %v4287_v46  ;;  %v1423_v22 = vmul.f32 %v4305_v43, %v1415_v12 }
 0x3bb   : > { %v1425_v13 = vsel %vm1401_vm8, %v1417_v4, %v4285_v42  ;;  %v2760_v55 = vmul.f32 -1.442695, %v1427_v11  ;;  %v1421_v29 = vmul.f32 %v4303_v54, %v1413_v35 }
 0x3bc   : > { %v2759_v30 = vmul.f32 -1.442695, %v1425_v13  ;;  %v1431_v42 = vsel %vm1407_vm9, %v1423_v22, %v4305_v43 }
 0x3bd   : > { %v1429_v46 = vsel %vm1405_vm10, %v1421_v29, %v4303_v54  ;;  %v2762_v9 = vmul.f32 -1.442695, %v1431_v42 }
 0x3be   : > { %v2761_v32 = vmul.f32 -1.442695, %v1429_v46 }
 0x482   : > { %v2987_v17 = vpop.f32.mrb[18].mxu0 }
 0x483   : > { %v1526_v19 = vmax.f32 %v2987_v17, 1e-30  ;;  %v1506_v20 = vpop.f32.mrb[19].mxu0 }
 0x484   : > { %v1525_v23 = vmax.f32 %v1506_v20, 1e-30 }
 0x485   : > { %3639 = vrsqrt.f32 %v1526_v19 }
 0x486   : > { %3641 = vrsqrt.f32 %v1525_v23 }
 0x487   : > { %3643 = vpow2.f32 %v2760_v55 }
 0x488   : > { %3645 = vpow2.f32 %v2759_v30 }
 0x48a   : > { %v2990_v2 = vpop.f32.mrb[20].mxu0 }
 0x48b   : > { %v1528_v33 = vmax.f32 %v2990_v2, 1e-30  ;;  %v1516_v38 = vpop.f32.mrb[21].mxu0 }
 0x48c   : > { %v1527_v47 = vmax.f32 %v1516_v38, 1e-30 }
 0x48d   : > { %3647 = vrsqrt.f32 %v1528_v33 }
 0x48e   : > { %3649 = vrsqrt.f32 %v1527_v47  ;;  %v3556_v47 = vld [vmem:[%s4687_s4 + $0x18] sm:$0xff]  }
 0x48f   : > { %v3640_v6 = vpop.eup %3639  ;;  %3651 = vpow2.f32 %v2762_v9 }
 0x490   : > { %v3642_v41 = vpop.eup %3641  ;;  %3653 = vpow2.f32 %v2761_v32  ;;  %v1534_v31 = vmul.f32 %v3640_v6, %v2987_v17  ;;  %v3555_v32 = vld [vmem:[%s4687_s4 + $0x10] sm:$0xff]  }
 0x491   : > { %v3644_v57 = vpop.eup %3643  ;;  %v1533_v44 = vmul.f32 %v3642_v41, %v1506_v20 }
 0x492   : > { %v3646_v27 = vpop.eup %3645  ;;  %3655 = vtanh.f32 %v1534_v31  ;;  %v1566_v43 = vadd.f32 1.0, %v3644_v57  ;;  %v3559_v31 = vld [vmem:[%s4687_s4 + $0x30] sm:$0xff]   ;;  %v3560_v57 = vld [vmem:[%s4687_s4 + $0x38] sm:$0xff]  }
 0x493   : > { %3657 = vtanh.f32 %v1533_v44  ;;  %v1565_v54 = vadd.f32 1.0, %v3646_v27 }
 0x494   : > { %3659 = vrcp.f32 %v1566_v43 }
 0x495   : > { %3661 = vrcp.f32 %v1565_v54 }
 0x497   : > { %v3648_v48 = vpop.eup %3647 }
 0x498   : > { %v3650_v34 = vpop.eup %3649  ;;  %v1536_v61 = vmul.f32 %v3648_v48, %v2990_v2 }
 0x499   : > { %v3652_v36 = vpop.eup %3651  ;;  %v1535_v53 = vmul.f32 %v3650_v34, %v1516_v38  ;;  %v3554_v38 = vld [vmem:[%s4687_s4 + $0x8] sm:$0xff]  }
 0x49a   : > { %v3654_v56 = vpop.eup %3653  ;;  %3663 = vtanh.f32 %v1536_v61  ;;  %v1568_v16 = vadd.f32 1.0, %v3652_v36 }
 0x49b   : > { %3665 = vtanh.f32 %v1535_v53  ;;  %v1567_v62 = vadd.f32 1.0, %v3654_v56 }
 0x49c   : > { %v3656_v14 = vpop.eup %3655  ;;  %3667 = vrcp.f32 %v1568_v16 }
 0x49d   : > { %v3658_v60 = vpop.eup %3657  ;;  %v1542_v63 = vmin.f32 %v3656_v14, 0.996  ;;  %3669 = vrcp.f32 %v1567_v62 }
 0x49e   : > { %v1541_v0 = vmin.f32 %v3658_v60, 0.996  ;;  %v3660_v25 = vpop.eup %3659 }
 0x49f   : > { %v1546_v1 = vmul.f32 %v3640_v6, %v1542_v63  ;;  %v3662_v12 = vpop.eup %3661  ;;  %v3557_v6 = vld [vmem:[%s4687_s4 + $0x20] sm:$0xff]  }
 0x4a0   : > { %v1545_v59 = vmul.f32 %v3642_v41, %v1541_v0  ;;  %v3558_v41 = vld [vmem:[%s4687_s4 + $0x28] sm:$0xff]  }
 0x4a1   : > { %v1550_v4 = vmul.f32 %v4344_v50, %v1546_v1 }
 0x4a2   : > { %v1549_v11 = vmul.f32 %v4340_v28, %v1545_v59 }
 0x4a3   : > { %v4374_v13 = vmul.f32 %v3660_v25, %v1550_v4 }
 0x4a4   : > { %v3664_v35 = vpop.eup %3663  ;;  %v4376_v17 = vmul.f32 %v3662_v12, %v1549_v11 }
 0x4a5   : > { %v3666_v55 = vpop.eup %3665  ;;  %v1544_v19 = vmin.f32 %v3664_v35, 0.996  ;;  %v1582_v23 = vmul.f32 %v4374_v13, %v4374_v13 }
 0x4a6   : > { %v1543_v20 = vmin.f32 %v3666_v55, 0.996  ;;  %v1581_v30 = vmul.f32 %v4376_v17, %v4376_v17  ;;  %v3668_v29 = vpop.eup %3667 }
 0x4a7   : > { %v1548_v22 = vmul.f32 %v3648_v48, %v1544_v19  ;;  %v3670_v46 = vpop.eup %3669 }
 0x4a8   : > { %v1547_v50 = vmul.f32 %v3650_v34, %v1543_v20  ;;  %3023 = vmatprep.mubr.f32.mxu1 %v1581_v30 }
 0x4a9   : > { %3024 = vmatmul.mubr.f32.vlgmr.msra.gmra.mrb[8].mxu1 %v1582_v23  ;;  %v1552_v28 = vmul.f32 %v4352_v52, %v1548_v22 }
 0x4aa   : > { %v1551_v42 = vmul.f32 %v4348_v51, %v1547_v50  ;;  %3280 = vmatpush3.bf16.msra.mxu1 %v4105_v5  ;;  %v3553_v51 = vld [vmem:[%s4687_s4] sm:$0xff]  }
 0x4ab   : > { %v4385_v2 = vmul.f32 %v3668_v29, %v1552_v28  ;;  %3282 = vmatprep.subr.bf16.mxu1 %v4110_v7  ;;  %3029 = vmatprep.subr.bf16.mxu0 %v3553_v51 }
 0x4ac   : > { %v4388_v9 = vmul.f32 %v3670_v46, %v1551_v42  ;;  %3030 = vmatpush3.bf16.msra.mxu0 %v3553_v51 }
 0x4ad   : > { %v1584_v52 = vmul.f32 %v4385_v2, %v4385_v2  ;;  %3031 = vmatprep.subr.bf16.mxu0 %v3554_v38 }
 0x4ae   : > { %v1583_v33 = vmul.f32 %v4388_v9, %v4388_v9  ;;  %3284 = vmatpush3.bf16.msra.mxu1 %v4110_v7 }
 0x4af   : > { %3286 = vmatprep.subr.bf16.mxu1 %v4113_v10 }
 0x4b0   : > { %3026 = vmatprep.mubr.f32.mxu1 %v1583_v33  ;;  %3032 = vmatpush3.bf16.msra.mxu0 %v3554_v38 }
 0x4b1   : > { %3027 = vmatmul.mubr.f32.gmra.mrb[10].mxu1 %v1584_v52  ;;  %3033 = vmatprep.subr.bf16.mxu0 %v3555_v32 }
 0x4b2   : > { %3288 = vmatpush3.bf16.msra.mxu1 %v4113_v10 }
 0x4b3   : > { %3290 = vmatprep.subr.bf16.mxu1 %v4116_v15 }
 0x4b4   : > { %3034 = vmatpush3.bf16.msra.mxu0 %v3555_v32 }
 0x4b5   : > { %3035 = vmatprep.subr.bf16.mxu0 %v3556_v47 }
 0x4b6   : > { %3292 = vmatpush3.bf16.msra.mxu1 %v4116_v15 }
 0x4b7   : > { %3294 = vmatprep.subr.bf16.mxu1 %v4119_v18 }
 0x4b8   : > { %3036 = vmatpush3.bf16.msra.mxu0 %v3556_v47 }
 0x4b9   : > { %3037 = vmatprep.subr.bf16.mxu0 %v3557_v6 }
 0x4ba   : > { %3296 = vmatpush3.bf16.msra.mxu1 %v4119_v18 }
 0x4bb   : > { %3298 = vmatprep.subr.bf16.mxu1 %v4124_v21 }
 0x4bc   : > { %3038 = vmatpush3.bf16.msra.mxu0 %v3557_v6 }
 0x4bd   : > { %3039 = vmatprep.subr.bf16.mxu0 %v3558_v41 }
 0x4be   : > { %3300 = vmatpush3.bf16.msra.mxu1 %v4124_v21 }
 0x4bf   : > { %3302 = vmatprep.subr.bf16.mxu1 %v4133_v24 }
 0x4c0   : > { %3040 = vmatpush3.bf16.msra.mxu0 %v3558_v41 }
 0x4c1   : > { %3041 = vmatprep.subr.bf16.mxu0 %v3559_v31 }
 0x4c2   : > { %3304 = vmatpush3.bf16.msra.mxu1 %v4133_v24 }
 0x4c3   : > { %3306 = vmatprep.subr.bf16.mxu1 %v4145_v26 }
 0x4c4   : > { %3042 = vmatpush3.bf16.msra.mxu0 %v3559_v31 }
 0x4c5   : > { %3043 = vmatprep.subr.bf16.mxu0 %v3560_v57 }
 0x4c6   : > { %3308 = vmatpush3.bf16.msra.mxu1 %v4145_v26 }
 0x4c8   : > { %3044 = vmatpush3.bf16.msra.mxu0 %v3560_v57 }
 0x57c   : > { %v3025_v44 = vpop.f32.mrb[8].mxu1 }
 0x57d   : > { %v1671_v27 = vmax.f32 %v3025_v44, 1e-30  ;;  %v1651_v43 = vpop.f32.mrb[9].mxu1 }
 0x57e   : > { %v1670_v54 = vmax.f32 %v1651_v43, 1e-30 }
 0x57f   : > { %3671 = vrsqrt.f32 %v1671_v27 }
 0x580   : > { %3673 = vrsqrt.f32 %v1670_v54 }
 0x584   : > { %v3028_v48 = vpop.f32.mrb[10].mxu1 }
 0x585   : > { %v1673_v34 = vmax.f32 %v3028_v48, 1e-30  ;;  %v1661_v61 = vpop.f32.mrb[11].mxu1 }
 0x586   : > { %v1672_v36 = vmax.f32 %v1661_v61, 1e-30 }
 0x587   : > { %3675 = vrsqrt.f32 %v1673_v34 }
 0x588   : > { %3677 = vrsqrt.f32 %v1672_v36 }
 0x589   : > { %v3672_v53 = vpop.eup %3671 }
 0x58a   : > { %v3674_v56 = vpop.eup %3673  ;;  %v1679_v14 = vmul.f32 %v3672_v53, %v3025_v44 }
 0x58b   : > { %v1678_v16 = vmul.f32 %v3674_v56, %v1651_v43 }
 0x58c   : > { %v1683_v60 = vmin.f32 %v1679_v14, 0.996 }
 0x58d   : > { %v1682_v62 = vmin.f32 %v1678_v16, 0.996 }
 0x58e   : > { %v1691_v63 = vsub.f32 1.0, %v1683_v60  ;;  %v1687_v28 = vadd.f32 1.0, %v1683_v60 }
 0x58f   : > { %v1690_v0 = vsub.f32 1.0, %v1682_v62  ;;  %v1686_v42 = vadd.f32 1.0, %v1682_v62 }
 0x590   : > { %3679 = vrcp.f32 %v1691_v63 }
 0x591   : > { %v3676_v1 = vpop.eup %3675  ;;  %3681 = vrcp.f32 %v1690_v0 }
 0x592   : > { %v3678_v59 = vpop.eup %3677  ;;  %v1681_v4 = vmul.f32 %v3676_v1, %v3028_v48 }
 0x593   : > { %v1680_v25 = vmul.f32 %v3678_v59, %v1661_v61 }
 0x594   : > { %v1685_v11 = vmin.f32 %v1681_v4, 0.996 }
 0x595   : > { %v1684_v12 = vmin.f32 %v1680_v25, 0.996 }
 0x596   : > { %v1693_v35 = vsub.f32 1.0, %v1685_v11  ;;  %v1689_v31 = vadd.f32 1.0, %v1685_v11 }
 0x597   : > { %v1692_v55 = vsub.f32 1.0, %v1684_v12  ;;  %v1688_v44 = vadd.f32 1.0, %v1684_v12 }
 0x598   : > { %3683 = vrcp.f32 %v1693_v35 }
 0x599   : > { %3685 = vrcp.f32 %v1692_v55 }
 0x59a   : > { %v3680_v19 = vpop.eup %3679 }
 0x59b   : > { %v3682_v20 = vpop.eup %3681  ;;  %v1699_v30 = vmul.f32 %v3680_v19, %v1691_v63 }
 0x59c   : > { %v1698_v22 = vmul.f32 %v3682_v20, %v1690_v0 }
 0x59d   : > { %v1703_v23 = vsub.f32 2.0, %v1699_v30 }
 0x59e   : > { %v1702_v50 = vsub.f32 2.0, %v1698_v22 }
 0x59f   : > { %v1707_v29 = vmul.f32 %v3680_v19, %v1703_v23 }
 0x5a0   : > { %v1706_v46 = vmul.f32 %v3682_v20, %v1702_v50 }
 0x5a1   : > { %v1711_v33 = vmul.f32 %v1707_v29, %v1687_v28 }
 0x5a2   : > { %v3684_v52 = vpop.eup %3683  ;;  %v1710_v51 = vmul.f32 %v1706_v46, %v1686_v42 }
 0x5a3   : > { %v3686_v38 = vpop.eup %3685  ;;  %3687 = vlog2.f32 %v1711_v33  ;;  %v1701_v32 = vmul.f32 %v3684_v52, %v1693_v35 }
 0x5a4   : > { %3689 = vlog2.f32 %v1710_v51  ;;  %v1700_v47 = vmul.f32 %v3686_v38, %v1692_v55 }
 0x5a5   : > { %v1705_v6 = vsub.f32 2.0, %v1701_v32 }
 0x5a6   : > { %v1704_v41 = vsub.f32 2.0, %v1700_v47 }
 0x5a7   : > { %v1709_v57 = vmul.f32 %v3684_v52, %v1705_v6 }
 0x5a8   : > { %v1708_v27 = vmul.f32 %v3686_v38, %v1704_v41  ;;  %v3572_v41 = vld [vmem:[%s4689_s6 + $0x34] ss:$8 sps:$4 sm:$0xff]  }
 0x5a9   : > { %v1713_v43 = vmul.f32 %v1709_v57, %v1689_v31  ;;  %v3570_v31 = vld [vmem:[%s4689_s6 + $0x30] ss:$8 sps:$4 sm:$0xff]   ;;  %v3575_v57 = vld [vmem:[%s4689_s6 + $0x44] ss:$8 sps:$4 sm:$0xff]  }
 0x5aa   : > { %v1712_v54 = vmul.f32 %v1708_v27, %v1688_v44  ;;  %v3573_v44 = vld [vmem:[%s4689_s6 + $0x40] ss:$8 sps:$4 sm:$0xff]   ;;  %v3578_v27 = vld [vmem:[%s4689_s6 + $0x54] ss:$8 sps:$4 sm:$0xff]  }
 0x5ab   : > { %3691 = vlog2.f32 %v1713_v43  ;;  %v3576_v43 = vld [vmem:[%s4689_s6 + $0x50] ss:$8 sps:$4 sm:$0xff]  }
 0x5ac   : > { %3693 = vlog2.f32 %v1712_v54  ;;  %v3581_v54 = vld [vmem:[%s4689_s6 + $0x64] ss:$8 sps:$4 sm:$0xff]  }
 0x5ad   : > { %v3688_v48 = vpop.eup %3687 }
 0x5ae   : > { %v3690_v34 = vpop.eup %3689  ;;  %v1717_v61 = vmul.f32 0.6931472, %v3688_v48  ;;  %v3579_v48 = vld [vmem:[%s4689_s6 + $0x60] ss:$8 sps:$4 sm:$0xff]  }
 0x5af   : > { %v1715_v36 = vmul.f32 0.6931472, %v3690_v34  ;;  %v3584_v34 = vld [vmem:[%s4689_s6 + $0x74] ss:$8 sps:$4 sm:$0xff]  }
 0x5b0   : > { %v1723_v14 = vmul.f32 0.5, %v1717_v61  ;;  %v3582_v61 = vld [vmem:[%s4689_s6 + $0x70] ss:$8 sps:$4 sm:$0xff]  }
 0x5b1   : > { %v1722_v16 = vmul.f32 0.5, %v1715_v36  ;;  %v2165_v36 = vld [vmem:[#allocation7 + $0x8] sm:$0xff] }
 0x5b2   : > { %v1727_v60 = vmul.f32 %v3672_v53, %v1723_v14  ;;  %v2167_v14 = vld [vmem:[#allocation7 + $0x18] sm:$0xff] }
 0x5b3   : > { %v1726_v62 = vmul.f32 %v3674_v56, %v1722_v16  ;;  %v3566_v56 = vld [vmem:[%s4689_s6 + $0x14] ss:$8 sps:$4 sm:$0xff]   ;;  %v2164_v16 = vld [vmem:[#allocation7] sm:$0xff] }
 0x5b4   : > { %v1731_v63 = vmul.f32 %v1727_v60, %v4374_v13  ;;  %v3561_v13 = vld [vmem:[%s4689_s6] ss:$8 sps:$4 sm:$0xff]   ;;  %v3309_v60 = vpack.c.bf16 %v2167_v14, %v2165_v36 }
 0x5b5   : > { %v3692_v0 = vpop.eup %3691  ;;  %v1730_v4 = vmul.f32 %v1726_v62, %v4376_v17  ;;  %v3563_v17 = vld [vmem:[%s4689_s6 + $0x4] ss:$8 sps:$4 sm:$0xff]   ;;  %v2166_v62 = vld [vmem:[#allocation7 + $0x10] sm:$0xff] }
 0x5b6   : > { %v3694_v25 = vpop.eup %3693  ;;  %v1721_v11 = vmul.f32 0.6931472, %v3692_v0  ;;  %2103 = vmatprep.subr.bf16.mxu0 %v3563_v17  ;;  %v2171_v0 = vld [vmem:[#allocation7 + $0x38] sm:$0xff]  ;;  %3310 = vmatprep.subr.bf16.mxu1 %v3309_v60  ;;  %v2192_v14 = vld [vmem:[#allocation7 + $0xe0] sm:$0xff]  ;;  %v2197_v60 = vld [vmem:[#allocation7 + $0x108] sm:$0xff] }
 0x5b7   : > { %v1719_v12 = vmul.f32 0.6931472, %v3694_v25  ;;  %v1734_v35 = vpack.c.bf16 %v1731_v63, %v1730_v4  ;;  %v2169_v63 = vld [vmem:[#allocation7 + $0x28] sm:$0xff]  ;;  %v3311_v4 = vpack.c.bf16 %v2166_v62, %v2164_v16  ;;  %v2194_v16 = vld [vmem:[#allocation7 + $0xf0] sm:$0xff]  ;;  %v2199_v62 = vld [vmem:[#allocation7 + $0x118] sm:$0xff] }
 0x5b8   : > { %v1725_v55 = vmul.f32 0.5, %v1721_v11  ;;  %v3313_v25 = vpack.c.bf16 %v2171_v0, %v2169_v63  ;;  %v2168_v11 = vld [vmem:[#allocation7 + $0x20] sm:$0xff]  ;;  %v3339_v63 = vpack.c.bf16 %v2194_v16, %v2192_v14  ;;  %v3341_v0 = vpack.c.bf16 %v2199_v62, %v2197_v60 }
 0x5b9   : > { %v1724_v19 = vmul.f32 0.5, %v1719_v12  ;;  %3045 = vmatprep.mubr.bf16.mxu0 %v1734_v35  ;;  %v2170_v12 = vld [vmem:[#allocation7 + $0x30] sm:$0xff]  ;;  %v2173_v35 = vld [vmem:[#allocation7 + $0x48] sm:$0xff] }
 0x5ba   : > { %v1729_v20 = vmul.f32 %v3676_v1, %v1725_v55  ;;  %v3567_v1 = vld [vmem:[%s4689_s6 + $0x20] ss:$8 sps:$4 sm:$0xff]   ;;  %v2175_v55 = vld [vmem:[#allocation7 + $0x58] sm:$0xff] }
 0x5bb   : > { %v1728_v30 = vmul.f32 %v3678_v59, %v1724_v19  ;;  %v2763_v59 = vld [vmem:[%s4688_s5] ss:$0 sm:$0xff]  ;;  %v3315_v19 = vpack.c.bf16 %v2170_v12, %v2168_v11  ;;  %v2201_v11 = vld [vmem:[#allocation7 + $0x128] sm:$0xff]  ;;  %v2203_v12 = vld [vmem:[#allocation7 + $0x138] sm:$0xff] }
 0x5bc   : > { %v1733_v22 = vmul.f32 %v1729_v20, %v4385_v2  ;;  %v3564_v2 = vld [vmem:[%s4689_s6 + $0x10] ss:$8 sps:$4 sm:$0xff]   ;;  %v3317_v20 = vpack.c.bf16 %v2175_v55, %v2173_v35  ;;  %v3345_v55 = vpack.c.bf16 %v2203_v12, %v2201_v11 }
 0x5bd   : > { %v1732_v23 = vmul.f32 %v1728_v30, %v4388_v9  ;;  %v3569_v9 = vld [vmem:[%s4689_s6 + $0x24] ss:$8 sps:$4 sm:$0xff]  }
 0x5be   : > { %v2172_v30 = vld [vmem:[#allocation7 + $0x40] sm:$0xff] }
 0x5bf   : > { %v1735_v53 = vpack.c.bf16 %v1733_v22, %v1732_v23  ;;  %v2174_v22 = vld [vmem:[#allocation7 + $0x50] sm:$0xff]  ;;  %v2177_v23 = vld [vmem:[#allocation7 + $0x68] sm:$0xff] }
 0x5c1   : > { %3046 = vmatmul.mubr.bf16.vlgmr.msra.gmra.mrb[24].mxu0 %v1735_v53  ;;  %v2179_v53 = vld [vmem:[#allocation7 + $0x78] sm:$0xff] }
 0x5c2   : > { %2135 = vmatprep.mubr.bf16.mxu0 %v3898_v3  ;;  %2104 = vmatpush1.bf16.msra.mxu0 %v3561_v13  ;;  %v3319_v13 = vpack.c.bf16 %v2174_v22, %v2172_v30  ;;  %v3321_v17 = vpack.c.bf16 %v2179_v53, %v2177_v23  ;;  %v2205_v30 = vld [vmem:[#allocation7 + $0x148] sm:$0xff]  ;;  %v2207_v22 = vld [vmem:[#allocation7 + $0x158] sm:$0xff] }
 0x5c3   : > { %2105 = vmatprep.subr.bf16.mxu0 %v3566_v56  ;;  %v2176_v56 = vld [vmem:[#allocation7 + $0x60] sm:$0xff]  ;;  %v3349_v53 = vpack.c.bf16 %v2207_v22, %v2205_v30 }
 0x5c6   : > { %2106 = vmatpush1.bf16.msra.mxu0 %v3564_v2  ;;  %v2178_v2 = vld [vmem:[#allocation7 + $0x70] sm:$0xff] }
 0x5c7   : > { %2107 = vmatprep.subr.bf16.mxu0 %v3569_v9  ;;  %v2181_v9 = vld [vmem:[#allocation7 + $0x88] sm:$0xff] }
 0x5ca   : > { %2108 = vmatpush1.bf16.msra.mxu0 %v3567_v1  ;;  %v2183_v1 = vld [vmem:[#allocation7 + $0x98] sm:$0xff] }
 0x5cb   : > { %2109 = vmatprep.subr.bf16.mxu0 %v3572_v41  ;;  %v2186_v41 = vld [vmem:[#allocation7 + $0xb0] sm:$0xff] }
 0x5ce   : > { %2110 = vmatpush1.bf16.msra.mxu0 %v3570_v31  ;;  %v2189_v31 = vld [vmem:[#allocation7 + $0xc8] sm:$0xff] }
 0x5cf   : > { %2111 = vmatprep.subr.bf16.mxu0 %v3575_v57  ;;  %v2191_v57 = vld [vmem:[#allocation7 + $0xd8] sm:$0xff] }
 0x5d2   : > { %2112 = vmatpush1.bf16.msra.mxu0 %v3573_v44 }
 0x5d3   : > { %2113 = vmatprep.subr.bf16.mxu0 %v3578_v27  ;;  %v3333_v27 = vpack.c.bf16 %v2191_v57, %v2189_v31 }
 0x5d6   : > { %2114 = vmatpush1.bf16.msra.mxu0 %v3576_v43  ;;  %v2188_v43 = vld [vmem:[#allocation7 + $0xc0] sm:$0xff] }
 0x5d7   : > { %2115 = vmatprep.subr.bf16.mxu0 %v3581_v54  ;;  %v2190_v54 = vld [vmem:[#allocation7 + $0xd0] sm:$0xff] }
 0x5da   : > { %2116 = vmatpush1.bf16.msra.mxu0 %v3579_v48  ;;  %v2193_v48 = vld [vmem:[#allocation7 + $0xe8] sm:$0xff] }
 0x5db   : > { %2117 = vmatprep.subr.bf16.mxu0 %v3584_v34  ;;  %v2195_v34 = vld [vmem:[#allocation7 + $0xf8] sm:$0xff] }
 0x5dc   : > { %v3337_v36 = vpack.c.bf16 %v2195_v34, %v2193_v48 }
 0x5de   : > { %2118 = vmatpush1.bf16.msra.mxu0 %v3582_v61  ;;  %v3335_v61 = vpack.c.bf16 %v2190_v54, %v2188_v43  ;;  %v2221_v43 = vld [vmem:[#allocation7 + $0x1c8] sm:$0xff]  ;;  %v2223_v54 = vld [vmem:[#allocation7 + $0x1d8] sm:$0xff] }
 0x5df   : > { %3374 = vmatprep.subr.bf16.mxu0 %v4105_v5  ;;  %v3365_v34 = vpack.c.bf16 %v2223_v54, %v2221_v43 }
 0x694   : > { %v3047_v50 = vpop.f32.mrb[24].mxu0 }
 0x695   : > { %v1841_v28 = vpop.f32.mrb[25].mxu0  ;;  %v4459_v46 = vadd.f32 %v3047_v50, %v2763_v59  ;;  %v3325_v50 = vpack.c.bf16 %v2183_v1, %v2181_v9 }
 0x696   : > { %v4457_v29 = vadd.f32 %v2763_v59, %v1841_v28  ;;  %v3048_v42 = vpop.f32.mrb[26].mxu0  ;;  %v2180_v28 = vld [vmem:[#allocation7 + $0x80] sm:$0xff] }
 0x697   : > { %v1844_v33 = vpop.f32.mrb[27].mxu0  ;;  %v4465_v38 = vadd.f32 %v3048_v42, %v2763_v59  ;;  %v1858_v47 = vmul.f32 %v4459_v46, %v4459_v46  ;;  %v2182_v42 = vld [vmem:[#allocation7 + $0x90] sm:$0xff] }
 0x698   : > { %v4461_v52 = vadd.f32 %v2763_v59, %v1844_v33  ;;  %v1856_v51 = vmul.f32 %v4457_v29, %v4457_v29  ;;  %v3323_v59 = vpack.c.bf16 %v2178_v2, %v2176_v56  ;;  %v2185_v33 = vld [vmem:[#allocation7 + $0xa8] sm:$0xff]  ;;  %v2211_v2 = vld [vmem:[#allocation7 + $0x178] sm:$0xff] }
 0x699   : > { %v1859_v6 = vmul.f32 %v4465_v38, %v4465_v38  ;;  %v2209_v56 = vld [vmem:[#allocation7 + $0x168] sm:$0xff] }
 0x69a   : > { %v1857_v32 = vmul.f32 %v4461_v52, %v4461_v52  ;;  %3081 = vmatprep.mubr.f32.mxu1 %v1856_v51  ;;  %v2187_v51 = vld [vmem:[#allocation7 + $0xb8] sm:$0xff]  ;;  %v3353_v1 = vpack.c.bf16 %v2211_v2, %v2209_v56 }
 0x69c   : > { %3082 = vmatmul.mubr.f32.vlgmr.msra.gmra.mrb[12].mxu1 %v1857_v32  ;;  %v3327_v32 = vpack.c.bf16 %v2182_v42, %v2180_v28  ;;  %v2213_v28 = vld [vmem:[#allocation7 + $0x188] sm:$0xff]  ;;  %v2215_v42 = vld [vmem:[#allocation7 + $0x198] sm:$0xff] }
 0x69d   : > { %3084 = vmatprep.mubr.f32.mxu1 %v1858_v47  ;;  %3312 = vmatpush1.bf16.msra.mxu1 %v3311_v4  ;;  %v3329_v47 = vpack.c.bf16 %v2187_v51, %v2185_v33  ;;  %v2196_v4 = vld [vmem:[#allocation7 + $0x100] sm:$0xff]  ;;  %v3357_v51 = vpack.c.bf16 %v2215_v42, %v2213_v28 }
 0x69e   : > { %3314 = vmatprep.subr.bf16.mxu1 %v3313_v25  ;;  %v2198_v25 = vld [vmem:[#allocation7 + $0x110] sm:$0xff] }
 0x69f   : > { %v3343_v35 = vpack.c.bf16 %v2198_v25, %v2196_v4 }
 0x6a0   : > { %3085 = vmatmul.mubr.f32.gmra.mrb[14].mxu1 %v1859_v6  ;;  %v2184_v6 = vld [vmem:[#allocation7 + $0xa0] sm:$0xff] }
 0x6a1   : > { %3316 = vmatpush1.bf16.msra.mxu1 %v3315_v19  ;;  %v3331_v44 = vpack.c.bf16 %v2186_v41, %v2184_v6  ;;  %v2200_v19 = vld [vmem:[#allocation7 + $0x120] sm:$0xff]  ;;  %v2217_v6 = vld [vmem:[#allocation7 + $0x1a8] sm:$0xff]  ;;  %v2219_v41 = vld [vmem:[#allocation7 + $0x1b8] sm:$0xff] }
 0x6a2   : > { %3318 = vmatprep.subr.bf16.mxu1 %v3317_v20  ;;  %v2202_v20 = vld [vmem:[#allocation7 + $0x130] sm:$0xff]  ;;  %v3361_v57 = vpack.c.bf16 %v2219_v41, %v2217_v6 }
 0x6a3   : > { %v3347_v23 = vpack.c.bf16 %v2202_v20, %v2200_v19 }
 0x6a5   : > { %3320 = vmatpush1.bf16.msra.mxu1 %v3319_v13  ;;  %v2204_v13 = vld [vmem:[#allocation7 + $0x140] sm:$0xff] }
 0x6a6   : > { %3322 = vmatprep.subr.bf16.mxu1 %v3321_v17  ;;  %v2206_v17 = vld [vmem:[#allocation7 + $0x150] sm:$0xff] }
 0x6a7   : > { %v3351_v9 = vpack.c.bf16 %v2206_v17, %v2204_v13 }
 0x6a9   : > { %3324 = vmatpush1.bf16.msra.mxu1 %v3323_v59  ;;  %v2208_v59 = vld [vmem:[#allocation7 + $0x160] sm:$0xff] }
 0x6aa   : > { %3326 = vmatprep.subr.bf16.mxu1 %v3325_v50  ;;  %v2210_v50 = vld [vmem:[#allocation7 + $0x170] sm:$0xff] }
 0x6ab   : > { %v3355_v33 = vpack.c.bf16 %v2210_v50, %v2208_v59 }
 0x6ad   : > { %3328 = vmatpush1.bf16.msra.mxu1 %v3327_v32  ;;  %v2212_v32 = vld [vmem:[#allocation7 + $0x180] sm:$0xff] }
 0x6ae   : > { %3330 = vmatprep.subr.bf16.mxu1 %v3329_v47  ;;  %v2214_v47 = vld [vmem:[#allocation7 + $0x190] sm:$0xff] }
 0x6af   : > { %v3359_v31 = vpack.c.bf16 %v2214_v47, %v2212_v32 }
 0x6b1   : > { %3332 = vmatpush1.bf16.msra.mxu1 %v3331_v44  ;;  %v2216_v44 = vld [vmem:[#allocation7 + $0x1a0] sm:$0xff] }
 0x6b2   : > { %3334 = vmatprep.subr.bf16.mxu1 %v3333_v27  ;;  %v2218_v27 = vld [vmem:[#allocation7 + $0x1b0] sm:$0xff] }
 0x6b3   : > { %v3363_v48 = vpack.c.bf16 %v2218_v27, %v2216_v44 }
 0x6b5   : > { %3336 = vmatpush1.bf16.msra.mxu1 %v3335_v61 }
 0x6b6   : > { %3338 = vmatprep.subr.bf16.mxu1 %v3337_v36 }
 0x6b9   : > { %3340 = vmatpush1.bf16.msra.mxu1 %v3339_v63 }
 0x6ba   : > { %3342 = vmatprep.subr.bf16.mxu1 %v3341_v0 }
 0x6bd   : > { %3344 = vmatpush1.bf16.msra.mxu1 %v3343_v35 }
 0x6be   : > { %3346 = vmatprep.subr.bf16.mxu1 %v3345_v55 }
 0x6c1   : > { %3348 = vmatpush1.bf16.msra.mxu1 %v3347_v23 }
 0x6c2   : > { %3350 = vmatprep.subr.bf16.mxu1 %v3349_v53 }
 0x6c5   : > { %3352 = vmatpush1.bf16.msra.mxu1 %v3351_v9 }
 0x6c6   : > { %3354 = vmatprep.subr.bf16.mxu1 %v3353_v1 }
 0x6c9   : > { %3356 = vmatpush1.bf16.msra.mxu1 %v3355_v33 }
 0x6ca   : > { %3358 = vmatprep.subr.bf16.mxu1 %v3357_v51 }
 0x6cd   : > { %3360 = vmatpush1.bf16.msra.mxu1 %v3359_v31 }
 0x6ce   : > { %3362 = vmatprep.subr.bf16.mxu1 %v3361_v57 }
 0x6d1   : > { %3364 = vmatpush1.bf16.msra.mxu1 %v3363_v48  ;;  %v4545_v48 = vld [vmem:[%s4142_s23] sm:$0xff] }
 0x6d2   : > { %3366 = vmatprep.subr.bf16.mxu1 %v3365_v34 }
 0x76f   : > { %v3083_v61 = vpop.f32.mrb[12].mxu1 }
 0x770   : > { %v1946_v36 = vmax.f32 %v3083_v61, 1e-30  ;;  %v1926_v14 = vpop.f32.mrb[13].mxu1  ;;  %vm1958_vm11 = vcmp.gt.f32.partialorder %v3083_v61, 9.649118 }
 0x771   : > { %v1945_v16 = vmax.f32 %v1926_v14, 1e-30  ;;  %vm1957_vm12 = vcmp.gt.f32.partialorder %v1926_v14, 9.649118 }
 0x772   : > { %3695 = vrsqrt.f32 %v1946_v36 }
 0x773   : > { %3697 = vrsqrt.f32 %v1945_v16  ;;  %v3086_v60 = vpop.f32.mrb[14].mxu1 }
 0x774   : > { %v1948_v62 = vmax.f32 %v3086_v60, 1e-30  ;;  %v1936_v63 = vpop.f32.mrb[15].mxu1  ;;  %vm1960_vm13 = vcmp.gt.f32.partialorder %v3086_v60, 9.649118 }
 0x775   : > { %v1947_v0 = vmax.f32 %v1936_v63, 1e-30  ;;  %vm1959_vm14 = vcmp.gt.f32.partialorder %v1936_v63, 9.649118 }
 0x776   : > { %3699 = vrsqrt.f32 %v1948_v62 }
 0x777   : > { %3701 = vrsqrt.f32 %v1947_v0  ;;  %v2222_v0 = vld [vmem:[#allocation7 + $0x1d0] sm:$0xff] }
 0x77c   : > { %v4504_v4 = vpop.eup %3695 }
 0x77d   : > { %v3698_v25 = vpop.eup %3697  ;;  %v1954_v11 = vmul.f32 %v4504_v4, %v3083_v61  ;;  %v1962_v12 = vmul.f32 3.106303, %v4504_v4 }
 0x77e   : > { %v1953_v35 = vmul.f32 %v3698_v25, %v1926_v14  ;;  %v1961_v55 = vmul.f32 3.106303, %v3698_v25 }
 0x77f   : > { %v1966_v19 = vmul.f32 %v1962_v12, %v4461_v52  ;;  %3703 = vtanh.f32 %v1954_v11  ;;  %v2224_v12 = vld [vmem:[#allocation7 + $0x1e0] sm:$0xff] }
 0x780   : > { %v4509_v20 = vpop.eup %3699  ;;  %v1965_v30 = vmul.f32 %v1961_v55, %v4457_v29  ;;  %3705 = vtanh.f32 %v1953_v35  ;;  %v2226_v35 = vld [vmem:[#allocation7 + $0x1f0] sm:$0xff] }
 0x781   : > { %v3702_v22 = vpop.eup %3701  ;;  %v1970_v23 = vsel %vm1958_vm11, %v1966_v19, %v4461_v52  ;;  %v1956_v53 = vmul.f32 %v4509_v20, %v3086_v60  ;;  %v1964_v13 = vmul.f32 3.106303, %v4509_v20  ;;  %v3371_v55 = vpack.c.bf16 %v2226_v35, %v2224_v12  ;;  %v2011_v19 = vld [vmem:[%s4690_s7] sm:$0x3] }
 0x782   : > { %v1969_v17 = vsel %vm1957_vm12, %v1965_v30, %v4457_v29  ;;  %v1955_v56 = vmul.f32 %v3702_v22, %v1936_v63  ;;  %v1963_v2 = vmul.f32 3.106303, %v3702_v22  ;;  %v4590_v63 = vld [vmem:[%s4142_s23 + $0x18] sm:$0xff]  ;;  %v2020_v30 = vrot.slane %v2011_v19, %v842_v39 }
 0x783   : > { %v1993_v9 = vpack.c.bf16 %v1970_v23, %v1969_v17  ;;  %3707 = vtanh.f32 %v1956_v53  ;;  %v1968_v1 = vmul.f32 %v1964_v13, %v4465_v38 }
 0x784   : > { %3709 = vtanh.f32 %v1955_v56  ;;  %v1967_v59 = vmul.f32 %v1963_v2, %v4459_v46 }
 0x785   : > { %2136 = vmatmul.mubr.bf16.vlgmr.msra.gmra.mrb[28].mxu0 %v1993_v9  ;;  %v1972_v50 = vsel %vm1960_vm13, %v1968_v1, %v4465_v38 }
 0x786   : > { %3376 = vmatpush3.bf16.msra.mxu0 %v4105_v5  ;;  %2145 = vmatprep.mubr.bf16.mxu0 %v3898_v3  ;;  %v1971_v28 = vsel %vm1959_vm14, %v1967_v59, %v4459_v46 }
 0x787   : > { %3378 = vmatprep.subr.bf16.mxu0 %v4110_v7  ;;  %v1994_v42 = vpack.c.bf16 %v1972_v50, %v1971_v28 }
 0x789   : > { %v3704_v33 = vpop.eup %3703 }
 0x78a   : > { %v3706_v51 = vpop.eup %3705  ;;  %v1978_v32 = vmin.f32 %v3704_v33, 0.996  ;;  %3380 = vmatpush3.bf16.msra.mxu0 %v4110_v7 }
 0x78b   : > { %v1977_v47 = vmin.f32 %v3706_v51, 0.996  ;;  %3382 = vmatprep.subr.bf16.mxu0 %v4113_v10 }
 0x78c   : > { %v4525_v6 = vmul.f32 %v1978_v32, %v1978_v32 }
 0x78d   : > { %v3708_v41 = vpop.eup %3707  ;;  %2146 = vmatmul.mubr.bf16.gmra.mrb[32].mxu0 %v1994_v42  ;;  %v1981_v5 = vmul.f32 %v3698_v25, %v1977_v47  ;;  %v4527_v3 = vmul.f32 %v1977_v47, %v1977_v47  ;;  %v2225_v25 = vld [vmem:[#allocation7 + $0x1e8] sm:$0xff] }
 0x78e   : > { %v3710_v31 = vpop.eup %3709  ;;  %v1980_v57 = vmin.f32 %v3708_v41, 0.996  ;;  %3384 = vmatpush3.bf16.msra.mxu0 %v4113_v10  ;;  %v4532_v44 = vmul.f32 %v4525_v6, %v4181_v49 }
 0x78f   : > { %v1979_v7 = vmin.f32 %v3710_v31, 0.996  ;;  %3386 = vmatprep.subr.bf16.mxu0 %v4116_v15  ;;  %v4536_v27 = vmul.f32 %v1981_v5, %v4457_v29  ;;  %v4540_v43 = vmul.f32 %v4527_v3, %v4178_v40 }
 0x790   : > { %v4542_v54 = vmul.f32 %v1980_v57, %v1980_v57  ;;  %v1984_v16 = vmul.f32 %v4509_v20, %v1980_v57  ;;  %v2016_v20 = vrot.slane %v2011_v19, %v838_v37 }
 0x791   : > { %v2373_v10 = vmul.f32 %v4545_v48, %v4536_v27  ;;  %v4549_v34 = vmul.f32 %v1979_v7, %v1979_v7  ;;  %v1983_v36 = vmul.f32 %v3702_v22, %v1979_v7 }
 0x792   : > { %3388 = vmatpush3.bf16.msra.mxu0 %v4116_v15  ;;  %v4554_v61 = vmul.f32 %v4542_v54, %v4190_v8  ;;  %v1982_v15 = vmul.f32 %v4504_v4, %v1978_v32  ;;  %v4582_v62 = vmul.f32 %v1984_v16, %v4465_v38  ;;  %v2227_v38 = vld [vmem:[#allocation7 + $0x1f8] sm:$0xff] }
 0x793   : > { %3119 = vmatprep.mubr.f32.mxu0 %v2373_v10  ;;  %3390 = vmatprep.subr.bf16.mxu0 %v4119_v18  ;;  %v4559_v29 = vmul.f32 %v4549_v34, %v4184_v58  ;;  %v3369_v11 = vpack.c.bf16 %v2227_v38, %v2225_v25 }
 0x794   : > { %v4568_v14 = vmul.f32 %v1982_v15, %v4461_v52  ;;  %v2479_v15 = vsub.f32 1.0, %v4525_v6 }
 0x796   : > { %3392 = vmatpush3.bf16.msra.mxu0 %v4119_v18  ;;  %v4573_v18 = vmul.f32 %v1983_v36, %v4459_v46  ;;  %v2220_v46 = vld [vmem:[#allocation7 + $0x1c0] sm:$0xff] }
 0x797   : > { %3394 = vmatprep.subr.bf16.mxu0 %v4124_v21  ;;  %v3367_v4 = vpack.c.bf16 %v2222_v0, %v2220_v46 }
 0x799   : > { %3368 = vmatpush1.bf16.msra.mxu1 %v3367_v4 }
 0x79a   : > { %3396 = vmatpush3.bf16.msra.mxu0 %v4124_v21  ;;  %v4577_v21 = vld [vmem:[%s4142_s23 + $0x8] sm:$0xff]  ;;  %3370 = vmatprep.subr.bf16.mxu1 %v3369_v11 }
 0x79b   : > { %3398 = vmatprep.subr.bf16.mxu0 %v4133_v24  ;;  %v2374_v60 = vmul.f32 %v4577_v21, %v4568_v14  ;;  %v2483_v4 = vmul.f32 %v4577_v21, %v2479_v15 }
 0x79d   : > { %3372 = vmatpush1.bf16.msra.mxu1 %v3371_v55 }
 0x79e   : > { %3400 = vmatpush3.bf16.msra.mxu0 %v4133_v24  ;;  %v4585_v24 = vld [vmem:[%s4142_s23 + $0x10] sm:$0xff] }
 0x79f   : > { %3402 = vmatprep.subr.bf16.mxu0 %v4145_v26  ;;  %v2375_v52 = vmul.f32 %v4585_v24, %v4573_v18 }
 0x7a2   : > { %3404 = vmatpush3.bf16.msra.mxu0 %v4145_v26  ;;  %v2376_v26 = vmul.f32 %v4590_v63, %v4582_v62 }
 0x7a5   : > { %3120 = vmatmul.mubr.f32.vlgmr.msra.gmra.mrb[22].mxu0 %v2374_v60  ;;  %v2478_v60 = vsub.f32 1.0, %v4527_v3 }
 0x7a6   : > { %3122 = vmatprep.mubr.f32.mxu0 %v2375_v52 }
 0x7a7   : > { %v2482_v35 = vmul.f32 %v4545_v48, %v2478_v60 }
 0x7a9   : > { %3123 = vmatmul.mubr.f32.gmra.mrb[36].mxu0 %v2376_v26 }
 0x858   : > { %v2137_v22 = vpop.f32.mrb[28].mxu0 }
 0x859   : > { %v4601_v23 = vadd.f32 %v2137_v22, %v2016_v20  ;;  %v2139_v53 = vpop.f32.mrb[29].mxu0 }
 0x85a   : > { %v4603_v13 = vadd.f32 %v2139_v53, %v2020_v30  ;;  %v2141_v17 = vpop.f32.mrb[30].mxu0 }
 0x85b   : > { %v2143_v56 = vpop.f32.mrb[31].mxu0  ;;  %v2156_v1 = vmul.f32 %v4601_v23, %v4601_v23  ;;  %v4611_v37 = vadd.f32 %v2141_v17, %v2016_v20 }
 0x85c   : > { %v2157_v2 = vmul.f32 %v4603_v13, %v4603_v13  ;;  %v4607_v9 = vadd.f32 %v2143_v56, %v2020_v30 }
 0x85d   : > { %v2158_v59 = vmul.f32 %v4611_v37, %v4611_v37 }
 0x85e   : > { %v2159_v45 = vmul.f32 %v4607_v9, %v4607_v9  ;;  %2292 = vmatprep.mubr.f32.mxu1 %v2157_v2 }
 0x85f   : > { %2293 = vmatmul.mubr.f32.vlgmr.msra.gmra.mrb[16].mxu1 %v2156_v1 }
 0x860   : > { %v2147_v39 = vpop.f32.mrb[32].mxu0  ;;  %2298 = vmatprep.mubr.f32.mxu1 %v2159_v45 }
 0x861   : > { %v4617_v50 = vadd.f32 %v2147_v39, %v2016_v20  ;;  %v2149_v28 = vpop.f32.mrb[33].mxu0 }
 0x862   : > { %v4619_v42 = vadd.f32 %v2149_v28, %v2020_v30  ;;  %v2151_v33 = vpop.f32.mrb[34].mxu0 }
 0x863   : > { %v2153_v51 = vpop.f32.mrb[35].mxu0  ;;  %2299 = vmatmul.mubr.f32.gmra.mrb[18].mxu1 %v2158_v59  ;;  %v2160_v41 = vmul.f32 %v4617_v50, %v4617_v50  ;;  %v4627_v5 = vadd.f32 %v2151_v33, %v2016_v20 }
 0x864   : > { %v2161_v32 = vmul.f32 %v4619_v42, %v4619_v42  ;;  %v4623_v47 = vadd.f32 %v2153_v51, %v2020_v30  ;;  %v2481_v30 = vsub.f32 1.0, %v4542_v54 }
 0x865   : > { %v2162_v57 = vmul.f32 %v4627_v5, %v4627_v5 }
 0x866   : > { %v2163_v31 = vmul.f32 %v4623_v47, %v4623_v47  ;;  %2304 = vmatprep.mubr.f32.mxu1 %v2161_v32 }
 0x867   : > { %2305 = vmatmul.mubr.f32.gmra.mrb[20].mxu1 %v2160_v41 }
 0x868   : > { %2310 = vmatprep.mubr.f32.mxu1 %v2163_v31 }
 0x86b   : > { %2311 = vmatmul.mubr.f32.gmra.mrb[22].mxu1 %v2162_v57 }
 0x878   : > { %v3121_v7 = vpop.f32.mrb[22].mxu0 }
 0x879   : > { %v2463_v10 = vmul.f32 2.0, %v3121_v7  ;;  %v2443_v36 = vpop.f32.mrb[23].mxu0 }
 0x87a   : > { %v2462_v16 = vmul.f32 2.0, %v2443_v36 }
 0x87b   : > { %v2467_v52 = vadd.f32 1.0, %v2463_v10 }
 0x87c   : > { %v2466_v26 = vadd.f32 1.0, %v2462_v16  ;;  %v3124_v46 = vpop.f32.mrb[36].mxu0 }
 0x87d   : > { %v2471_v0 = vadd.f32 %v2467_v52, %v4181_v49  ;;  %v2495_v25 = vadd.f32 %v4532_v44, %v2467_v52  ;;  %v2465_v38 = vmul.f32 2.0, %v3124_v46  ;;  %v2453_v11 = vpop.f32.mrb[37].mxu0  ;;  %v2480_v44 = vsub.f32 1.0, %v4549_v34 }
 0x87e   : > { %v2470_v12 = vadd.f32 %v2466_v26, %v4178_v40  ;;  %v2494_v6 = vadd.f32 %v4540_v43, %v2466_v26  ;;  %v2464_v55 = vmul.f32 2.0, %v2453_v11 }
 0x87f   : > { %v2475_v3 = vmul.f32 %v2471_v0, %v4568_v14  ;;  %v2499_v19 = vmax.f32 %v2495_v25, 1e-15  ;;  %v2469_v20 = vadd.f32 1.0, %v2465_v38  ;;  %v2484_v34 = vmul.f32 %v4585_v24, %v2480_v44 }
 0x880   : > { %v2474_v49 = vmul.f32 %v2470_v12, %v4536_v27  ;;  %v2498_v21 = vmax.f32 %v2494_v6, 1e-15  ;;  %v2468_v22 = vadd.f32 1.0, %v2464_v55  ;;  %v2485_v27 = vmul.f32 %v4590_v63, %v2481_v30 }
 0x881   : > { %v2487_v53 = vadd.f32 %v2483_v4, %v2475_v3  ;;  %3711 = vrcp.f32 %v2499_v19  ;;  %v2473_v40 = vadd.f32 %v2469_v20, %v4190_v8  ;;  %v2497_v48 = vadd.f32 %v4554_v61, %v2469_v20 }
 0x882   : > { %v2486_v43 = vadd.f32 %v2482_v35, %v2474_v49  ;;  %3713 = vrcp.f32 %v2498_v21  ;;  %v2472_v14 = vadd.f32 %v2468_v22, %v4184_v58  ;;  %v2496_v17 = vadd.f32 %v4559_v29, %v2468_v22 }
 0x883   : > { %v2477_v54 = vmul.f32 %v2473_v40, %v4582_v62  ;;  %v2501_v56 = vmax.f32 %v2497_v48, 1e-15 }
 0x884   : > { %v2476_v2 = vmul.f32 %v2472_v14, %v4573_v18  ;;  %v2500_v1 = vmax.f32 %v2496_v17, 1e-15 }
 0x885   : > { %v2489_v45 = vadd.f32 %v2485_v27, %v2477_v54  ;;  %3715 = vrcp.f32 %v2501_v56 }
 0x886   : > { %v2488_v8 = vadd.f32 %v2484_v34, %v2476_v2  ;;  %3717 = vrcp.f32 %v2500_v1 }
 0x88b   : > { %v3712_v61 = vpop.eup %3711 }
 0x88c   : > { %v3714_v39 = vpop.eup %3713  ;;  %v2507_v58 = vmul.f32 %v3712_v61, %v2499_v19 }
 0x88d   : > { %v2506_v59 = vmul.f32 %v3714_v39, %v2498_v21 }
 0x88e   : > { %v2511_v29 = vsub.f32 2.0, %v2507_v58 }
 0x88f   : > { %v3716_v28 = vpop.eup %3715  ;;  %v2510_v62 = vsub.f32 2.0, %v2506_v59 }
 0x890   : > { %v3718_v33 = vpop.eup %3717  ;;  %v2515_v63 = vmul.f32 %v3712_v61, %v2511_v29  ;;  %v2509_v51 = vmul.f32 %v3716_v28, %v2501_v56 }
 0x891   : > { %v2514_v32 = vmul.f32 %v3714_v39, %v2510_v62  ;;  %v2508_v18 = vmul.f32 %v3718_v33, %v2500_v1 }
 0x892   : > { %v2519_v24 = vmul.f32 %v2515_v63, %v2487_v53  ;;  %v2513_v41 = vsub.f32 2.0, %v2509_v51 }
 0x893   : > { %v2518_v31 = vmul.f32 %v2514_v32, %v2486_v43  ;;  %v2512_v57 = vsub.f32 2.0, %v2508_v18 }
 0x894   : > { %v2517_v7 = vmul.f32 %v3716_v28, %v2513_v41  ;;  %2531 = vst [vmem:[%s535_s22 + $0x8] sm:$0xff] %v2519_v24 }
 0x895   : > { %2530 = vst [vmem:[%s535_s22] sm:$0xff] %v2518_v31  ;;  %v2516_v10 = vmul.f32 %v3718_v33, %v2512_v57 }
 0x896   : > { %v2521_v15 = vmul.f32 %v2517_v7, %v2489_v45 }
 0x897   : > { %v2520_v36 = vmul.f32 %v2516_v10, %v2488_v8 }
 0x898   : > { %2533 = vst [vmem:[%s535_s22 + $0x18] sm:$0xff] %v2521_v15 }
 0x899   : > { %2532 = vst [vmem:[%s535_s22 + $0x10] sm:$0xff] %v2520_v36 }
 0x932   : > { %v2294_v16 = vpop.f32.mrb[16].mxu1 }
 0x933   : > { %v2317_v60 = vmax.f32 %v2294_v16, 1e-30  ;;  %v2296_v52 = vpop.f32.mrb[17].mxu1 }
 0x934   : > { %v2318_v26 = vmax.f32 %v2296_v52, 1e-30 }
 0x935   : > { %3719 = vrsqrt.f32 %v2317_v60 }
 0x936   : > { %3721 = vrsqrt.f32 %v2318_v26  ;;  %v2300_v46 = vpop.f32.mrb[18].mxu1 }
 0x937   : > { %v2319_v0 = vmax.f32 %v2300_v46, 1e-30  ;;  %v2302_v4 = vpop.f32.mrb[19].mxu1 }
 0x938   : > { %v2320_v25 = vmax.f32 %v2302_v4, 1e-30 }
 0x939   : > { %3723 = vrsqrt.f32 %v2319_v0 }
 0x93a   : > { %3725 = vrsqrt.f32 %v2320_v25  ;;  %v2306_v38 = vpop.f32.mrb[20].mxu1 }
 0x93b   : > { %v2321_v11 = vmax.f32 %v2306_v38, 1e-30  ;;  %v2308_v12 = vpop.f32.mrb[21].mxu1 }
 0x93c   : > { %v2322_v35 = vmax.f32 %v2308_v12, 1e-30 }
 0x93d   : > { %3727 = vrsqrt.f32 %v2321_v11 }
 0x93e   : > { %3729 = vrsqrt.f32 %v2322_v35  ;;  %v2312_v6 = vpop.f32.mrb[22].mxu1 }
 0x93f   : > { %v3720_v55 = vpop.eup %3719  ;;  %v2323_v3 = vmax.f32 %v2312_v6, 1e-30  ;;  %v2314_v19 = vpop.f32.mrb[23].mxu1 }
 0x940   : > { %v3722_v20 = vpop.eup %3721  ;;  %v2333_v30 = vmul.f32 %v3720_v55, %v2294_v16  ;;  %v2324_v49 = vmax.f32 %v2314_v19, 1e-30 }
 0x941   : > { %v2334_v21 = vmul.f32 %v3722_v20, %v2296_v52  ;;  %3731 = vrsqrt.f32 %v2323_v3 }
 0x942   : > { %3733 = vtanh.f32 %v2333_v30 }
 0x943   : > { %v3724_v22 = vpop.eup %3723  ;;  %3735 = vtanh.f32 %v2334_v21 }
 0x944   : > { %v3726_v44 = vpop.eup %3725  ;;  %v2335_v53 = vmul.f32 %v3724_v22, %v2300_v46  ;;  %3737 = vrsqrt.f32 %v2324_v49 }
 0x945   : > { %v2336_v40 = vmul.f32 %v3726_v44, %v2302_v4 }
 0x946   : > { %3739 = vtanh.f32 %v2335_v53 }
 0x947   : > { %v3728_v48 = vpop.eup %3727  ;;  %3741 = vtanh.f32 %v2336_v40 }
 0x948   : > { %v3730_v43 = vpop.eup %3729  ;;  %v2337_v14 = vmul.f32 %v3728_v48, %v2306_v38 }
 0x949   : > { %v2338_v17 = vmul.f32 %v3730_v43, %v2308_v12 }
 0x94a   : > { %3743 = vtanh.f32 %v2337_v14 }
 0x94b   : > { %v3732_v54 = vpop.eup %3731  ;;  %3745 = vtanh.f32 %v2338_v17 }
 0x94c   : > { %v3734_v27 = vpop.eup %3733  ;;  %v2339_v56 = vmul.f32 %v3732_v54, %v2312_v6 }
 0x94d   : > { %v3736_v2 = vpop.eup %3735  ;;  %v2349_v34 = vmin.f32 %v3734_v27, 0.996 }
 0x94e   : > { %v3738_v1 = vpop.eup %3737  ;;  %v2350_v45 = vmin.f32 %v3736_v2, 0.996  ;;  %3747 = vtanh.f32 %v2339_v56 }
 0x94f   : > { %v2357_v8 = vmul.f32 %v3720_v55, %v2349_v34  ;;  %v2340_v61 = vmul.f32 %v3738_v1, %v2314_v19 }
 0x950   : > { %v3740_v39 = vpop.eup %3739  ;;  %v2358_v58 = vmul.f32 %v3722_v20, %v2350_v45 }
 0x951   : > { %v3742_v59 = vpop.eup %3741  ;;  %v2365_v29 = vmul.f32 %v2357_v8, %v4601_v23  ;;  %v2351_v28 = vmin.f32 %v3740_v39, 0.996  ;;  %3749 = vtanh.f32 %v2340_v61 }
 0x952   : > { %v2366_v62 = vmul.f32 %v2358_v58, %v4603_v13  ;;  %v2352_v33 = vmin.f32 %v3742_v59, 0.996 }
 0x953   : > { %2522 = vst [vmem:[%s4662_s20] sm:$0xff] %v2365_v29  ;;  %v2359_v63 = vmul.f32 %v3724_v22, %v2351_v28 }
 0x954   : > { %v3744_v51 = vpop.eup %3743  ;;  %2523 = vst [vmem:[%s4662_s20 + $0x8] sm:$0xff] %v2366_v62  ;;  %v2360_v32 = vmul.f32 %v3726_v44, %v2352_v33 }
 0x955   : > { %v3746_v18 = vpop.eup %3745  ;;  %v2367_v24 = vmul.f32 %v2359_v63, %v4611_v37  ;;  %v2353_v41 = vmin.f32 %v3744_v51, 0.996 }
 0x956   : > { %v2368_v31 = vmul.f32 %v2360_v32, %v4607_v9  ;;  %v2354_v23 = vmin.f32 %v3746_v18, 0.996 }
 0x957   : > { %2524 = vst [vmem:[%s4662_s20 + $0x10] sm:$0xff] %v2367_v24  ;;  %v2361_v57 = vmul.f32 %v3728_v48, %v2353_v41 }
 0x958   : > { %v3748_v13 = vpop.eup %3747  ;;  %2525 = vst [vmem:[%s4662_s20 + $0x18] sm:$0xff] %v2368_v31  ;;  %v2362_v7 = vmul.f32 %v3730_v43, %v2354_v23 }
 0x959   : > { %v2369_v10 = vmul.f32 %v2361_v57, %v4617_v50  ;;  %v2355_v15 = vmin.f32 %v3748_v13, 0.996 }
 0x95a   : > { %v2370_v36 = vmul.f32 %v2362_v7, %v4619_v42 }
 0x95b   : > { %v3750_v16 = vpop.eup %3749  ;;  %2526 = vst [vmem:[%s4662_s20 + $0x20] sm:$0xff] %v2369_v10  ;;  %v2363_v60 = vmul.f32 %v3732_v54, %v2355_v15 }
 0x95c   : > { %2527 = vst [vmem:[%s4662_s20 + $0x28] sm:$0xff] %v2370_v36  ;;  %v2356_v37 = vmin.f32 %v3750_v16, 0.996 }
 0x95d   : > { %v2371_v9 = vmul.f32 %v2363_v60, %v4627_v5 }
 0x95e   : > { %v2364_v52 = vmul.f32 %v3738_v1, %v2356_v37 }
 0x95f   : > { %2528 = vst [vmem:[%s4662_s20 + $0x30] sm:$0xff] %v2371_v9 }
 0x960   : > { %v2372_v26 = vmul.f32 %v2364_v52, %v4623_v47 }
 0x962   : > { %2529 = vst [vmem:[%s4662_s20 + $0x38] sm:$0xff] %v2372_v26 }
 0x963 PF: > { %s26_s21 = sadd.s32 1, %s3885_s21  }
 0x964   : > { %p23_p7 = scmp.ge.s32.totalorder %s26_s21, 4  }
 0x966   :  { %25 = sbr.rel (!%p23_p7) target bundleno = 5 (0x5), region = 126 }
 0x96d   :  { %2575 = vsyncpa [#allocation3], 1 }
 0x96e   :  { %2577 = vsyncpa [#allocation3 + $0x1], 1 }
 0x96f   :  { %2578 = vsyncpa [#allocation5], 1 }
 0x970   :  { %2579 = vsyncpa [#allocation8], 1 }

</bundles_post_ra>
